<compile_context>
chip_gen: v6e
topology: v6e:2x2x1
jax: 0.10.0
libtpu: 0.0.40
codegen_flags: <defaults>
</compile_context>

<pallas_src>
import math

import jax
import jax.numpy as jnp
from jax.experimental import pallas as pl
from jax.experimental.pallas import tpu as pltpu

# --- config (matches BlackholioModelConfig defaults) ---
ENTITY_DIM = 5        # entity_feature_dim
F_PAD = 8             # entity features padded 5 -> 8 (feature 5 = bias/"real entity" indicator)
MAX_ENTITIES = 50     # max_entities
E_PAD = 56            # entities padded to a sublane-friendly count (masked after exp)
HIDDEN = 256          # hidden_size
ATTN_HIDDEN = 128     # attention_hidden
NUM_HEADS = 4         # attention_heads
HEAD_DIM = ATTN_HIDDEN // NUM_HEADS
LN_EPS = 1e-5


def entity_attention_kernel(
    ent_ref,                # [TB*E_PAD, F_PAD]  (feature ENTITY_DIM carries the K/V bias)
    ply_ref,                # [TB, HIDDEN]
    w_qq_ref, b_qq_ref,     # fused query path   (HIDDEN -> ATTN), 1/sqrt(hd) folded in
    w_ekv_ref,              # fused key|value path (F_PAD -> 2*ATTN), bias folded into row 5
    w_oo_ref, b_oo_ref,     # fused output path  (ATTN -> HIDDEN)
    gamma_ref, beta_ref,    # LayerNorm(HIDDEN)
    hs_ref,                 # [ATTN, ATTN] block-diagonal head-sum matrix
    mask_ref,               # [E_PAD, ATTN] 1.0 for real entities, 0.0 for padded slots
    out_ref,                # [TB, HIDDEN]
):
    tb = ply_ref.shape[0]
    ent = ent_ref[...]                                    # [TB*E_PAD, F_PAD]
    ply = ply_ref[...]                                    # [TB, HIDDEN]

    # fused projections (MXU, f32 accumulate)
    q = jnp.dot(ply, w_qq_ref[...], preferred_element_type=jnp.float32) + b_qq_ref[...]   # [TB, A]
    kv = jnp.dot(ent, w_ekv_ref[...], preferred_element_type=jnp.float32)                 # [TB*E, 2A]

    kv3 = kv.reshape(tb, E_PAD, 2 * ATTN_HIDDEN)          # free view (E_PAD % 8 == 0)
    k3 = kv3[:, :, :ATTN_HIDDEN]                          # 128-lane-aligned slice (free)
    v3 = kv3[:, :, ATTN_HIDDEN:]                          # 128-lane-aligned slice (free)
    q3 = q.reshape(tb, 1, ATTN_HIDDEN)

    # Per-head scores, replicated across each head's 32 lanes:
    #   prod[b,e,a]   = q[b,a] * k[b,e,a]
    #   scores[b,e,a] = sum_{a' in head(a)} prod[b,e,a']   (via block-diagonal matmul)
    prod = k3 * q3                                        # [TB, E, A]  (VPU)
    scores = jnp.dot(prod.reshape(tb * E_PAD, ATTN_HIDDEN), hs_ref[...],
                     preferred_element_type=jnp.float32).reshape(tb, E_PAD, ATTN_HIDDEN)

    # softmax over entities (sublane axis).  Padded entity rows have exactly-zero scores
    # (zero features + zero bias indicator), so the raw max is finite; their exp() terms
    # are excluded from numerator and denominator by the 0/1 mask -> exact reference math.
    m = jnp.max(scores, axis=1, keepdims=True)            # [TB, 1, A]
    p = jnp.exp(scores - m) * mask_ref[...][None, :, :]   # [TB, E, A], padded rows zeroed
    denom = jnp.sum(p, axis=1, keepdims=True)             # [TB, 1, A]
    num = jnp.sum(p * v3, axis=1, keepdims=True)          # [TB, 1, A]
    # normalize AFTER the reduction (exact divide kept for accuracy; result is tiny anyway)
    attn = (num * pl.reciprocal(denom, approx=False)).reshape(tb, ATTN_HIDDEN)

    # fused out_proj + output_projection, then LayerNorm over HIDDEN
    out = jnp.dot(attn, w_oo_ref[...], preferred_element_type=jnp.float32) + b_oo_ref[...]  # [TB, H]
    mean = jnp.mean(out, axis=-1, keepdims=True)
    var = jnp.mean((out - mean) ** 2, axis=-1, keepdims=True)
    y = (out - mean) * jax.lax.rsqrt(var + LN_EPS)
    out_ref[...] = y * gamma_ref[...] + beta_ref[...]


def init_params(key):
    ks = jax.random.split(key, 16)
    def nrm(k, shape, scale=0.05):
        return (scale * jax.random.normal(k, shape)).astype(jnp.float32)
    return {
        "w_ep":  nrm(ks[0], (ENTITY_DIM, ATTN_HIDDEN)),
        "b_ep":  nrm(ks[1], (1, ATTN_HIDDEN)),
        "w_q":   nrm(ks[2], (HIDDEN, ATTN_HIDDEN)),
        "b_q":   nrm(ks[3], (1, ATTN_HIDDEN)),
        "w_iq":  nrm(ks[4], (ATTN_HIDDEN, ATTN_HIDDEN)),
        "b_iq":  nrm(ks[5], (1, ATTN_HIDDEN)),
        "w_ik":  nrm(ks[6], (ATTN_HIDDEN, ATTN_HIDDEN)),
        "b_ik":  nrm(ks[7], (1, ATTN_HIDDEN)),
        "w_iv":  nrm(ks[8], (ATTN_HIDDEN, ATTN_HIDDEN)),
        "b_iv":  nrm(ks[9], (1, ATTN_HIDDEN)),
        "w_o":   nrm(ks[10], (ATTN_HIDDEN, ATTN_HIDDEN)),
        "b_o":   nrm(ks[11], (1, ATTN_HIDDEN)),
        "w_out": nrm(ks[12], (ATTN_HIDDEN, HIDDEN)),
        "b_out": nrm(ks[13], (1, HIDDEN)),
        "gamma": jnp.ones((1, HIDDEN), jnp.float32),
        "beta":  jnp.zeros((1, HIDDEN), jnp.float32),
    }


def fold_params(P):
    """Pre-fold chained Linears into fused matmuls (+ biases) at full f32 precision."""
    hp = jax.lax.Precision.HIGHEST
    dot = lambda a, b: jnp.dot(a, b, precision=hp)
    scale = 1.0 / math.sqrt(HEAD_DIM)

    w_qq = dot(P["w_q"], P["w_iq"]) * scale                       # (HIDDEN, ATTN)
    b_qq = (dot(P["b_q"], P["w_iq"]) + P["b_iq"]) * scale         # (1, ATTN)
    w_ek = dot(P["w_ep"], P["w_ik"])                              # (ENTITY_DIM, ATTN)
    b_ek = dot(P["b_ep"], P["w_ik"]) + P["b_ik"]                  # (1, ATTN)
    w_ev = dot(P["w_ep"], P["w_iv"])                              # (ENTITY_DIM, ATTN)
    b_ev = dot(P["b_ep"], P["w_iv"]) + P["b_iv"]                  # (1, ATTN)
    w_oo = dot(P["w_o"], P["w_out"])                              # (ATTN, HIDDEN)
    b_oo = dot(P["b_o"], P["w_out"]) + P["b_out"]                 # (1, HIDDEN)

    # fused K|V weight, bias folded into the augmented "ones" feature row (row ENTITY_DIM)
    w_ekv = jnp.zeros((F_PAD, 2 * ATTN_HIDDEN), jnp.float32)
    w_ekv = w_ekv.at[:ENTITY_DIM, :ATTN_HIDDEN].set(w_ek)
    w_ekv = w_ekv.at[:ENTITY_DIM, ATTN_HIDDEN:].set(w_ev)
    w_ekv = w_ekv.at[ENTITY_DIM, :ATTN_HIDDEN].set(b_ek[0])
    w_ekv = w_ekv.at[ENTITY_DIM, ATTN_HIDDEN:].set(b_ev[0])

    head_id = jnp.arange(ATTN_HIDDEN) // HEAD_DIM
    head_sum = (head_id[:, None] == head_id[None, :]).astype(jnp.float32)   # (ATTN, ATTN)

    # 0/1 real-entity mask, lane-dense so the in-kernel multiply needs no lane broadcast
    mask = (jnp.arange(E_PAD) < MAX_ENTITIES).astype(jnp.float32)
    mask = mask[:, None] * jnp.ones((1, ATTN_HIDDEN), jnp.float32)          # (E_PAD, ATTN)

    return [w_qq, b_qq, w_ekv, w_oo, b_oo, P["gamma"], P["beta"], head_sum, mask]


def _round_up(x, m):
    return ((x + m - 1) // m) * m


def _select_tiling(batch):
    """Generation-aware batch-tile / VMEM-limit choice.

    v5e/v6e have 128 MiB VMEM per TensorCore -> TB=128 with a raised scoped limit.
    v7x has only 64 MiB per TensorCore -> keep TB=64 and a conservative limit
    (the lane-padded entity operand is budgeted at ~2 MiB/buffer there).
    """
    try:
        vmem_cap = pltpu.get_tpu_info().vmem_capacity_bytes
    except Exception:  # unknown / query unsupported -> conservative
        vmem_cap = 64 << 20
    if vmem_cap >= (96 << 20):
        tb_target, vmem_limit = 128, 80 * 1024 * 1024
    else:
        tb_target, vmem_limit = 64, 48 * 1024 * 1024
    tb = min(tb_target, _round_up(max(batch, 1), 8))
    return tb, vmem_limit


def entity_attention(entity_features_flat, player_features, params):
    B = entity_features_flat.shape[0]
    tb, vmem_limit = _select_tiling(B)
    num_tiles = (B + tb - 1) // tb
    b_pad = num_tiles * tb

    # Wrapper-side layout plumbing (free): reshape, feature-augment (bias indicator),
    # zero-pad batch and entity dims.  Padded entities/batch rows are exact zeros.
    ent = entity_features_flat.reshape(B, MAX_ENTITIES, ENTITY_DIM).astype(jnp.float32)
    ind = jnp.ones((B, MAX_ENTITIES, 1), jnp.float32)
    zeros_tail = jnp.zeros((B, MAX_ENTITIES, F_PAD - ENTITY_DIM - 1), jnp.float32)
    ent_aug = jnp.concatenate([ent, ind, zeros_tail], axis=-1)          # [B, 50, 8]
    ent_aug = jnp.pad(ent_aug, ((0, b_pad - B), (0, E_PAD - MAX_ENTITIES), (0, 0)))
    ent2d = ent_aug.reshape(b_pad * E_PAD, F_PAD)
    ply = jnp.pad(player_features.astype(jnp.float32), ((0, b_pad - B), (0, 0)))

    fused = fold_params(params)

    in_specs = [
        pl.BlockSpec((tb * E_PAD, F_PAD), lambda i: (i, 0)),
        pl.BlockSpec((tb, HIDDEN), lambda i: (i, 0)),
    ] + [pl.BlockSpec(p.shape, lambda i: (0, 0)) for p in fused]   # params stay resident

    out = pl.pallas_call(
        entity_attention_kernel,
        out_shape=jax.ShapeDtypeStruct((b_pad, HIDDEN), jnp.float32),
        grid=(num_tiles,),
        in_specs=in_specs,
        out_specs=pl.BlockSpec((tb, HIDDEN), lambda i: (i, 0)),
        compiler_params=pltpu.CompilerParams(
            dimension_semantics=("parallel",),
            vmem_limit_bytes=vmem_limit,
        ),
    )(ent2d, ply, *fused)
    return out[:B]


def entity_attention_reference(entity_features_flat, player_features, P):
    """Pure-JAX reference (mirrors the PyTorch forward, eval mode, unfolded weights)."""
    B = entity_features_flat.shape[0]
    ent = entity_features_flat.reshape(B, MAX_ENTITIES, ENTITY_DIM)
    k_in = jnp.einsum("bef,fa->bea", ent, P["w_ep"]) + P["b_ep"]
    q_in = player_features @ P["w_q"] + P["b_q"]
    q = q_in @ P["w_iq"] + P["b_iq"]
    k = jnp.einsum("bea,ac->bec", k_in, P["w_ik"]) + P["b_ik"]
    v = jnp.einsum("bea,ac->bec", k_in, P["w_iv"]) + P["b_iv"]
    qh = q.reshape(B, NUM_HEADS, HEAD_DIM) / math.sqrt(HEAD_DIM)
    kh = k.reshape(B, MAX_ENTITIES, NUM_HEADS, HEAD_DIM)
    vh = v.reshape(B, MAX_ENTITIES, NUM_HEADS, HEAD_DIM)
    scores = jnp.einsum("bhd,behd->bhe", qh, kh)
    probs = jax.nn.softmax(scores, axis=-1)
    o = jnp.einsum("bhe,behd->bhd", probs, vh).reshape(B, ATTN_HIDDEN)
    o = o @ P["w_o"] + P["b_o"]
    out = o @ P["w_out"] + P["b_out"]
    mean = out.mean(axis=-1, keepdims=True)
    var = ((out - mean) ** 2).mean(axis=-1, keepdims=True)
    return (out - mean) / jnp.sqrt(var + LN_EPS) * P["gamma"] + P["beta"]


if __name__ == "__main__":
    key = jax.random.PRNGKey(0)
    k_ent, k_ply, k_par = jax.random.split(key, 3)

    BATCH = 2
    entity_features = jax.random.normal(
        k_ent, (BATCH, MAX_ENTITIES * ENTITY_DIM), dtype=jnp.float32)
    player_features = jax.random.normal(k_ply, (BATCH, HIDDEN), dtype=jnp.float32)
    params = init_params(k_par)

    out = entity_attention(entity_features, player_features, params)
    out = jax.block_until_ready(out)

    ref = entity_attention_reference(entity_features, player_features, params)
    assert out.shape == (BATCH, HIDDEN)
    err = float(jnp.max(jnp.abs(out - ref)))
    assert jnp.allclose(out, ref, atol=2e-4, rtol=2e-4), f"max abs diff = {err}"

    print("KERNEL_OK")
</pallas_src>

<mosaic_0001>
module attributes {stable_mosaic.version = 11 : i64} {
  func.func @entity_attention_kernel(%arg0: i32, %arg1: memref<448x8xf32, #tpu.memory_space<vmem>>, %arg2: memref<8x256xf32, #tpu.memory_space<vmem>>, %arg3: memref<256x128xf32, #tpu.memory_space<vmem>>, %arg4: memref<1x128xf32, #tpu.memory_space<vmem>>, %arg5: memref<8x256xf32, #tpu.memory_space<vmem>>, %arg6: memref<128x256xf32, #tpu.memory_space<vmem>>, %arg7: memref<1x256xf32, #tpu.memory_space<vmem>>, %arg8: memref<1x256xf32, #tpu.memory_space<vmem>>, %arg9: memref<1x256xf32, #tpu.memory_space<vmem>>, %arg10: memref<128x128xf32, #tpu.memory_space<vmem>>, %arg11: memref<56x128xf32, #tpu.memory_space<vmem>>, %arg12: memref<8x256xf32, #tpu.memory_space<vmem>>) attributes {dimension_semantics = [#tpu.dimension_semantics<parallel>], iteration_bounds = array<i64: 1>, scalar_prefetch = 0 : i64, scratch_operands = 0 : i64, tpu.core_type = #tpu.core_type<tc>, window_params = [{transform_indices = @transform_0, window_bounds = array<i64: 448, 8>}, {transform_indices = @transform_1, window_bounds = array<i64: 8, 256>}, {pipeline_mode = #tpu.pipeline_mode<synchronous>, transform_indices = @transform_2, window_bounds = array<i64: 256, 128>}, {pipeline_mode = #tpu.pipeline_mode<synchronous>, transform_indices = @transform_3, window_bounds = array<i64: 1, 128>}, {pipeline_mode = #tpu.pipeline_mode<synchronous>, transform_indices = @transform_4, window_bounds = array<i64: 8, 256>}, {pipeline_mode = #tpu.pipeline_mode<synchronous>, transform_indices = @transform_5, window_bounds = array<i64: 128, 256>}, {pipeline_mode = #tpu.pipeline_mode<synchronous>, transform_indices = @transform_6, window_bounds = array<i64: 1, 256>}, {pipeline_mode = #tpu.pipeline_mode<synchronous>, transform_indices = @transform_7, window_bounds = array<i64: 1, 256>}, {pipeline_mode = #tpu.pipeline_mode<synchronous>, transform_indices = @transform_8, window_bounds = array<i64: 1, 256>}, {pipeline_mode = #tpu.pipeline_mode<synchronous>, transform_indices = @transform_9, window_bounds = array<i64: 128, 128>}, {pipeline_mode = #tpu.pipeline_mode<synchronous>, transform_indices = @transform_10, window_bounds = array<i64: 56, 128>}, {transform_indices = @transform_11, window_bounds = array<i64: 8, 256>}]} {
    %c0 = arith.constant 0 : index
    %c0_0 = arith.constant 0 : index
    %0 = vector.load %arg1[%c0, %c0_0] : memref<448x8xf32, #tpu.memory_space<vmem>>, vector<448x8xf32>
    %c0_1 = arith.constant 0 : index
    %c0_2 = arith.constant 0 : index
    %1 = vector.load %arg2[%c0_1, %c0_2] : memref<8x256xf32, #tpu.memory_space<vmem>>, vector<8x256xf32>
    %c0_3 = arith.constant 0 : index
    %c0_4 = arith.constant 0 : index
    %2 = vector.load %arg3[%c0_3, %c0_4] : memref<256x128xf32, #tpu.memory_space<vmem>>, vector<256x128xf32>
    %cst = arith.constant dense<0.000000e+00> : vector<8x128xf32>
    %3 = tpu.matmul %1, %2, %cst {dimension_numbers = #tpu.dot_dimension_numbers<[1], [0], [0], [1], [0, 0, 1, 1], [], []>} : vector<8x256xf32>, vector<256x128xf32>, vector<8x128xf32> -> vector<8x128xf32>
    %c0_5 = arith.constant 0 : index
    %c0_6 = arith.constant 0 : index
    %4 = vector.load %arg4[%c0_5, %c0_6] : memref<1x128xf32, #tpu.memory_space<vmem>>, vector<1x128xf32>
    %5 = vector.broadcast %4 : vector<1x128xf32> to vector<8x128xf32>
    %6 = arith.addf %3, %5 : vector<8x128xf32>
    %c0_7 = arith.constant 0 : index
    %c0_8 = arith.constant 0 : index
    %7 = vector.load %arg5[%c0_7, %c0_8] : memref<8x256xf32, #tpu.memory_space<vmem>>, vector<8x256xf32>
    %cst_9 = arith.constant dense<0.000000e+00> : vector<448x256xf32>
    %8 = tpu.matmul %0, %7, %cst_9 {dimension_numbers = #tpu.dot_dimension_numbers<[1], [0], [0], [1], [0, 0, 1, 1], [], []>} : vector<448x8xf32>, vector<8x256xf32>, vector<448x256xf32> -> vector<448x256xf32>
    %9 = vector.shape_cast %8 : vector<448x256xf32> to vector<8x56x256xf32>
    %10 = vector.extract_strided_slice %9 {offsets = [0, 0, 0], sizes = [8, 56, 128], strides = [1, 1, 1]} : vector<8x56x256xf32> to vector<8x56x128xf32>
    %11 = vector.extract_strided_slice %9 {offsets = [0, 0, 128], sizes = [8, 56, 128], strides = [1, 1, 1]} : vector<8x56x256xf32> to vector<8x56x128xf32>
    %12 = vector.shape_cast %6 : vector<8x128xf32> to vector<8x1x128xf32>
    %13 = vector.broadcast %12 : vector<8x1x128xf32> to vector<8x56x128xf32>
    %14 = arith.mulf %10, %13 : vector<8x56x128xf32>
    %15 = vector.shape_cast %14 : vector<8x56x128xf32> to vector<448x128xf32>
    %c0_10 = arith.constant 0 : index
    %c0_11 = arith.constant 0 : index
    %16 = vector.load %arg10[%c0_10, %c0_11] : memref<128x128xf32, #tpu.memory_space<vmem>>, vector<128x128xf32>
    %cst_12 = arith.constant dense<0.000000e+00> : vector<448x128xf32>
    %17 = tpu.matmul %15, %16, %cst_12 {dimension_numbers = #tpu.dot_dimension_numbers<[1], [0], [0], [1], [0, 0, 1, 1], [], []>} : vector<448x128xf32>, vector<128x128xf32>, vector<448x128xf32> -> vector<448x128xf32>
    %18 = vector.shape_cast %17 : vector<448x128xf32> to vector<8x56x128xf32>
    %cst_13 = arith.constant dense<0xFF800000> : vector<8x128xf32>
    %19 = vector.multi_reduction <maximumf>, %18, %cst_13 [1] : vector<8x56x128xf32> to vector<8x128xf32>
    %20 = vector.shape_cast %19 : vector<8x128xf32> to vector<8x1x128xf32>
    %21 = vector.broadcast %20 : vector<8x1x128xf32> to vector<8x56x128xf32>
    %22 = arith.subf %18, %21 : vector<8x56x128xf32>
    %23 = math.exp %22 : vector<8x56x128xf32>
    %c0_14 = arith.constant 0 : index
    %c0_15 = arith.constant 0 : index
    %24 = vector.load %arg11[%c0_14, %c0_15] : memref<56x128xf32, #tpu.memory_space<vmem>>, vector<56x128xf32>
    %25 = vector.shape_cast %24 : vector<56x128xf32> to vector<1x56x128xf32>
    %26 = vector.broadcast %25 : vector<1x56x128xf32> to vector<8x56x128xf32>
    %27 = arith.mulf %23, %26 : vector<8x56x128xf32>
    %cst_16 = arith.constant dense<0.000000e+00> : vector<8x128xf32>
    %28 = vector.multi_reduction <add>, %27, %cst_16 [1] : vector<8x56x128xf32> to vector<8x128xf32>
    %29 = vector.shape_cast %28 : vector<8x128xf32> to vector<8x1x128xf32>
    %30 = arith.mulf %27, %11 : vector<8x56x128xf32>
    %cst_17 = arith.constant dense<0.000000e+00> : vector<8x128xf32>
    %31 = vector.multi_reduction <add>, %30, %cst_17 [1] : vector<8x56x128xf32> to vector<8x128xf32>
    %32 = vector.shape_cast %31 : vector<8x128xf32> to vector<8x1x128xf32>
    %33 = tpu.reciprocal %29 : vector<8x1x128xf32> -> vector<8x1x128xf32>
    %34 = arith.mulf %32, %33 : vector<8x1x128xf32>
    %35 = vector.shape_cast %34 : vector<8x1x128xf32> to vector<8x128xf32>
    %c0_18 = arith.constant 0 : index
    %c0_19 = arith.constant 0 : index
    %36 = vector.load %arg6[%c0_18, %c0_19] : memref<128x256xf32, #tpu.memory_space<vmem>>, vector<128x256xf32>
    %cst_20 = arith.constant dense<0.000000e+00> : vector<8x256xf32>
    %37 = tpu.matmul %35, %36, %cst_20 {dimension_numbers = #tpu.dot_dimension_numbers<[1], [0], [0], [1], [0, 0, 1, 1], [], []>} : vector<8x128xf32>, vector<128x256xf32>, vector<8x256xf32> -> vector<8x256xf32>
    %c0_21 = arith.constant 0 : index
    %c0_22 = arith.constant 0 : index
    %38 = vector.load %arg7[%c0_21, %c0_22] : memref<1x256xf32, #tpu.memory_space<vmem>>, vector<1x256xf32>
    %39 = vector.broadcast %38 : vector<1x256xf32> to vector<8x256xf32>
    %40 = arith.addf %37, %39 : vector<8x256xf32>
    %cst_23 = arith.constant dense<0.000000e+00> : vector<8xf32>
    %41 = vector.multi_reduction <add>, %40, %cst_23 [1] : vector<8x256xf32> to vector<8xf32>
    %42 = vector.shape_cast %41 : vector<8xf32> to vector<8x1xf32>
    %cst_24 = arith.constant 2.560000e+02 : f32
    %43 = vector.broadcast %cst_24 : f32 to vector<8x1xf32>
    %44 = arith.divf %42, %43 : vector<8x1xf32>
    %45 = vector.broadcast %44 : vector<8x1xf32> to vector<8x256xf32>
    %46 = arith.subf %40, %45 : vector<8x256xf32>
    %47 = arith.mulf %46, %46 : vector<8x256xf32>
    %cst_25 = arith.constant dense<0.000000e+00> : vector<8xf32>
    %48 = vector.multi_reduction <add>, %47, %cst_25 [1] : vector<8x256xf32> to vector<8xf32>
    %49 = vector.shape_cast %48 : vector<8xf32> to vector<8x1xf32>
    %cst_26 = arith.constant 2.560000e+02 : f32
    %50 = vector.broadcast %cst_26 : f32 to vector<8x1xf32>
    %51 = arith.divf %49, %50 : vector<8x1xf32>
    %52 = vector.broadcast %44 : vector<8x1xf32> to vector<8x256xf32>
    %53 = arith.subf %40, %52 : vector<8x256xf32>
    %cst_27 = arith.constant 9.99999974E-6 : f32
    %54 = vector.broadcast %cst_27 : f32 to vector<8x1xf32>
    %55 = arith.addf %51, %54 : vector<8x1xf32>
    %56 = math.rsqrt %55 : vector<8x1xf32>
    %57 = vector.broadcast %56 : vector<8x1xf32> to vector<8x256xf32>
    %58 = arith.mulf %53, %57 : vector<8x256xf32>
    %c0_28 = arith.constant 0 : index
    %c0_29 = arith.constant 0 : index
    %59 = vector.load %arg8[%c0_28, %c0_29] : memref<1x256xf32, #tpu.memory_space<vmem>>, vector<1x256xf32>
    %60 = vector.broadcast %59 : vector<1x256xf32> to vector<8x256xf32>
    %61 = arith.mulf %58, %60 : vector<8x256xf32>
    %c0_30 = arith.constant 0 : index
    %c0_31 = arith.constant 0 : index
    %62 = vector.load %arg9[%c0_30, %c0_31] : memref<1x256xf32, #tpu.memory_space<vmem>>, vector<1x256xf32>
    %63 = vector.broadcast %62 : vector<1x256xf32> to vector<8x256xf32>
    %64 = arith.addf %61, %63 : vector<8x256xf32>
    %c0_32 = arith.constant 0 : index
    %c0_33 = arith.constant 0 : index
    %65 = vector.load %arg12[%c0_32, %c0_33] : memref<8x256xf32, #tpu.memory_space<vmem>>, vector<8x256xf32>
    tpu.vector_store %arg12[%c0_32, %c0_33], %64 {strides = array<i32>} : memref<8x256xf32, #tpu.memory_space<vmem>>, vector<8x256xf32>,
    return
  }
  func.func @transform_0(%arg0: i32) -> (i32, i32) {
    %c0_i32 = arith.constant 0 : i32
    %c0_i32_0 = arith.constant 0 : i32
    return %arg0, %c0_i32 : i32, i32
  }
  func.func @transform_1(%arg0: i32) -> (i32, i32) {
    %c0_i32 = arith.constant 0 : i32
    %c0_i32_0 = arith.constant 0 : i32
    return %arg0, %c0_i32 : i32, i32
  }
  func.func @transform_2(%arg0: i32) -> (i32, i32) {
    %c0_i32 = arith.constant 0 : i32
    %c0_i32_0 = arith.constant 0 : i32
    %c0_i32_1 = arith.constant 0 : i32
    return %c0_i32, %c0_i32_0 : i32, i32
  }
  func.func @transform_3(%arg0: i32) -> (i32, i32) {
    %c0_i32 = arith.constant 0 : i32
    %c0_i32_0 = arith.constant 0 : i32
    %c0_i32_1 = arith.constant 0 : i32
    return %c0_i32, %c0_i32_0 : i32, i32
  }
  func.func @transform_4(%arg0: i32) -> (i32, i32) {
    %c0_i32 = arith.constant 0 : i32
    %c0_i32_0 = arith.constant 0 : i32
    %c0_i32_1 = arith.constant 0 : i32
    return %c0_i32, %c0_i32_0 : i32, i32
  }
  func.func @transform_5(%arg0: i32) -> (i32, i32) {
    %c0_i32 = arith.constant 0 : i32
    %c0_i32_0 = arith.constant 0 : i32
    %c0_i32_1 = arith.constant 0 : i32
    return %c0_i32, %c0_i32_0 : i32, i32
  }
  func.func @transform_6(%arg0: i32) -> (i32, i32) {
    %c0_i32 = arith.constant 0 : i32
    %c0_i32_0 = arith.constant 0 : i32
    %c0_i32_1 = arith.constant 0 : i32
    return %c0_i32, %c0_i32_0 : i32, i32
  }
  func.func @transform_7(%arg0: i32) -> (i32, i32) {
    %c0_i32 = arith.constant 0 : i32
    %c0_i32_0 = arith.constant 0 : i32
    %c0_i32_1 = arith.constant 0 : i32
    return %c0_i32, %c0_i32_0 : i32, i32
  }
  func.func @transform_8(%arg0: i32) -> (i32, i32) {
    %c0_i32 = arith.constant 0 : i32
    %c0_i32_0 = arith.constant 0 : i32
    %c0_i32_1 = arith.constant 0 : i32
    return %c0_i32, %c0_i32_0 : i32, i32
  }
  func.func @transform_9(%arg0: i32) -> (i32, i32) {
    %c0_i32 = arith.constant 0 : i32
    %c0_i32_0 = arith.constant 0 : i32
    %c0_i32_1 = arith.constant 0 : i32
    return %c0_i32, %c0_i32_0 : i32, i32
  }
  func.func @transform_10(%arg0: i32) -> (i32, i32) {
    %c0_i32 = arith.constant 0 : i32
    %c0_i32_0 = arith.constant 0 : i32
    %c0_i32_1 = arith.constant 0 : i32
    return %c0_i32, %c0_i32_0 : i32, i32
  }
  func.func @transform_11(%arg0: i32) -> (i32, i32) {
    %c0_i32 = arith.constant 0 : i32
    %c0_i32_0 = arith.constant 0 : i32
    return %arg0, %c0_i32 : i32, i32
  }
}

</mosaic_0001>

<bundles_post_ra>
// kernel: tpu_custom_call.1
= control target key start
LH: loop header
LB: loop body
LE: loop exit
PB: predicated region body
PF: predicated region fallthrough
CT: control target
= control target key end

     0   :  { %16 = vsyncpa [#allocation3], 0  ;;  %s3710_s0 = inlined_call_operand.vmem [shape: f32[448,8], index: 0, kind: input, shape index: {}]   ;;  %s3711_s1 = inlined_call_operand.vmem [shape: f32[8,256], index: 1, kind: input, shape index: {}]   ;;  %s3712_s2 = inlined_call_operand.vmem [shape: f32[256,128], index: 2, kind: input, shape index: {}]   ;;  %s3713_s3 = inlined_call_operand.vmem [shape: f32[1,128], index: 3, kind: input, shape index: {}]   ;;  %s3714_s4 = inlined_call_operand.vmem [shape: f32[8,256], index: 4, kind: input, shape index: {}]   ;;  %s3715_s5 = inlined_call_operand.hbm [shape: f32[128,256], index: 5, kind: input, shape index: {}]   ;;  %s3716_s6 = inlined_call_operand.vmem [shape: f32[1,256], index: 6, kind: input, shape index: {}]   ;;  %s3717_s7 = inlined_call_operand.vmem [shape: f32[1,256], index: 7, kind: input, shape index: {}]   ;;  %s3718_s8 = inlined_call_operand.vmem [shape: f32[1,256], index: 8, kind: input, shape index: {}]   ;;  %s3719_s9 = inlined_call_operand.vmem [shape: f32[128,128], index: 9, kind: input, shape index: {}]   ;;  %s3720_s10 = inlined_call_operand.vmem [shape: f32[56,128], index: 10, kind: input, shape index: {}]   ;;  %s3721_s11 = inlined_call_operand.hbm [shape: f32[8,256], index: 11, kind: output, shape index: {}]  }
   0x1   :  { %17 = vsyncpa [#allocation4], 0  ;;  %s2559_s17 = smov [#allocation2]  }
   0x2   :  { %s33_s18 = sshll.u32 %s2559_s17, 4  ;;  %s34_s18 = int_to_ptr.vmem [resolvable:$true] %s33_s18 }
   0x3   :  { %s2523_s19 = scalar_lea.vmem %s34_s18, 4096  ;;  %p2528_p1 = scmp.lt.s32.totalorder %s34_s18, %s34_s18 }
   0x4   :  { %p2524_p0 = scmp.ne.s32.totalorder %s34_s18, %s2523_s19  ;;  %p2529_p2 = scmp.lt.s32.totalorder %s2523_s19, %s2523_s19 }
   0x6   :  { %p2530_p3 = por %p2529_p2, %p2528_p1 }
   0x8   :  { %p2531_p4 = pnand %p2530_p3, %p2524_p0 }
   0xa   :  { %2534 = shalt.err (!%p2531_p4)
}
   0xb   :  { %s2560_s20 = smov 256   ;;  %s2561_s21 = smov 16  }
   0xc   :  { %39 = dma.hbm_to_vmem [thread:$0]  %s3715_s5, 4096, %s34_s18, [#allocation3], %s2560_s20, %s2560_s20, %s2561_s21  }
   0xd   :  { %2555 = dma.done.wait [#allocation3], 4096  }
   0xe   :  { %2556 = vsyncadd [#allocation3], 4294963200  ;;  %v3722_v0 = vmov 0.0   ;;  %v142_v1 = vld [vmem:[%s3712_s2 + $0xf8] sm:$0xff]  ;;  %v2635_v2 = vld [vmem:[%s3714_s4 + $0x8] sm:$0xff]  ;;  %vm222_vm0 = vcmask 64512  }
   0xf   :  { %509 = vmatprep.mubr.f32.mxu1 %v3722_v0  ;;  %v126_v3 = vld [vmem:[%s3712_s2 + $0x78] sm:$0xff]  ;;  %2147 = vmatprep.subr.mxu0 %v142_v1  ;;  %v2644_v4 = vld [vmem:[%s3714_s4] sm:$0xff]  ;;  %v141_v5 = vld [vmem:[%s3712_s2 + $0xf0] sm:$0xff]  ;;  %vm1942_vm1 = vcmask 1041409   ;;  %vm1944_vm2 = vcmask 1042434   ;;  %vm1946_vm3 = vcmask 1043459  }
  0x10   :  { %2370 = vmatprep.subr.mxu1 %v2635_v2  ;;  %v62_v6 = vld [vmem:[%s3710_s0 + $0x48] sm:$0xff]  ;;  %2148 = vmatpush3.msra.mxu0 %v126_v3  ;;  %v125_v7 = vld [vmem:[%s3712_s2 + $0x70] sm:$0xff]  ;;  %v139_v10 = vld [vmem:[%s3712_s2 + $0xe0] sm:$0xff]  ;;  %vm1948_vm4 = vcmask 1044484   ;;  %vm1950_vm5 = vcmask 1045509   ;;  %vm1952_vm6 = vcmask 1046534  }
  0x11   :  { %2371 = vmatpush1.msra.mxu1 %v2644_v4  ;;  %v140_v8 = vld [vmem:[%s3712_s2 + $0xe8] sm:$0xff]  ;;  %2149 = vmatprep.subr.mxu0 %v141_v5  ;;  %v63_v11 = vld [vmem:[%s3710_s0 + $0x50] sm:$0xff]  ;;  %v123_v12 = vld [vmem:[%s3712_s2 + $0x60] sm:$0xff]  ;;  %vm1954_vm7 = vcmask 1047559   ;;  %s2564_s22 = smov [#allocation5]  }
  0x12   :  { %2100 = vmatmul.mubr.msk.f32.vlgmr.msra.gmra.mxu1 %vm222_vm0, %v62_v6  ;;  %v124_v9 = vld [vmem:[%s3712_s2 + $0x68] sm:$0xff]  ;;  %2150 = vmatpush3.msra.mxu0 %v125_v7  ;;  %v138_v13 = vld [vmem:[%s3712_s2 + $0xd8] sm:$0xff]  ;;  %v137_v15 = vld [vmem:[%s3712_s2 + $0xd0] sm:$0xff]  ;;  %s2081_s23 = sshll.u32 %s2564_s22, 4  ;;  %s2082_s23 = int_to_ptr.vmem [resolvable:$true] %s2081_s23 }
  0x13   :  { %515 = vmatprep.mubr.f32.mxu1 %v3722_v0  ;;  %2151 = vmatprep.subr.mxu0 %v140_v8  ;;  %v122_v14 = vld [vmem:[%s3712_s2 + $0x58] sm:$0xff]  ;;  %v121_v17 = vld [vmem:[%s3712_s2 + $0x50] sm:$0xff]  ;;  %v136_v18 = vld [vmem:[%s3712_s2 + $0xc8] sm:$0xff]  ;;  %p2540_p6 = scmp.lt.s32.totalorder %s2082_s23, %s2082_s23 }
  0x14   :  { %2152 = vmatpush3.msra.mxu0 %v124_v9  ;;  %v64_v16 = vld [vmem:[%s3710_s0 + $0x58] sm:$0xff]  ;;  %v120_v19 = vld [vmem:[%s3712_s2 + $0x48] sm:$0xff]  ;;  %v135_v20 = vld [vmem:[%s3712_s2 + $0xc0] sm:$0xff] }
  0x15   :  { %2153 = vmatprep.subr.mxu0 %v139_v10  ;;  %v65_v21 = vld [vmem:[%s3710_s0 + $0x60] sm:$0xff]  ;;  %v134_v23 = vld [vmem:[%s3712_s2 + $0xb8] sm:$0xff]  ;;  %v110_v24 = vld [vmem:[%s3711_s1 + $0x8] sm:$0xff] }
  0x16   :  { %2101 = vmatmul.mubr.msk.f32.gmra.mxu1 %vm222_vm0, %v63_v11  ;;  %2154 = vmatpush3.msra.mxu0 %v123_v12  ;;  %v119_v22 = vld [vmem:[%s3712_s2 + $0x40] sm:$0xff]  ;;  %v118_v25 = vld [vmem:[%s3712_s2 + $0x38] sm:$0xff]  ;;  %v133_v26 = vld [vmem:[%s3712_s2 + $0xb0] sm:$0xff] }
  0x17   :  { %521 = vmatprep.mubr.f32.mxu1 %v3722_v0  ;;  %2155 = vmatprep.subr.mxu0 %v138_v13  ;;  %v66_v27 = vld [vmem:[%s3710_s0 + $0x68] sm:$0xff]  ;;  %v117_v28 = vld [vmem:[%s3712_s2 + $0x30] sm:$0xff]  ;;  %v131_v31 = vld [vmem:[%s3712_s2 + $0xa0] sm:$0xff] }
  0x18   :  { %2156 = vmatpush3.msra.mxu0 %v122_v14  ;;  %214 = vmatprep.mubr.f32.mxu0 %v110_v24  ;;  %v132_v29 = vld [vmem:[%s3712_s2 + $0xa8] sm:$0xff]  ;;  %v67_v32 = vld [vmem:[%s3710_s0 + $0x70] sm:$0xff]  ;;  %v115_v33 = vld [vmem:[%s3712_s2 + $0x20] sm:$0xff] }
  0x19   :  { %2157 = vmatprep.subr.mxu0 %v137_v15  ;;  %v116_v30 = vld [vmem:[%s3712_s2 + $0x28] sm:$0xff]  ;;  %v130_v34 = vld [vmem:[%s3712_s2 + $0x98] sm:$0xff]  ;;  %v129_v36 = vld [vmem:[%s3712_s2 + $0x90] sm:$0xff] }
  0x1a   :  { %2102 = vmatmul.mubr.msk.f32.gmra.mxu1 %vm222_vm0, %v64_v16  ;;  %2158 = vmatpush3.msra.mxu0 %v121_v17  ;;  %v114_v35 = vld [vmem:[%s3712_s2 + $0x18] sm:$0xff]  ;;  %v113_v38 = vld [vmem:[%s3712_s2 + $0x10] sm:$0xff]  ;;  %v128_v39 = vld [vmem:[%s3712_s2 + $0x88] sm:$0xff] }
  0x1b   :  { %527 = vmatprep.mubr.f32.mxu1 %v3722_v0  ;;  %2159 = vmatprep.subr.mxu0 %v136_v18  ;;  %v68_v37 = vld [vmem:[%s3710_s0 + $0x78] sm:$0xff]  ;;  %v112_v40 = vld [vmem:[%s3712_s2 + $0x8] sm:$0xff]  ;;  %v127_v41 = vld [vmem:[%s3712_s2 + $0x80] sm:$0xff] }
  0x1c   :  { %2160 = vmatpush3.msra.mxu0 %v120_v19  ;;  %v69_v42 = vld [vmem:[%s3710_s0 + $0x80] sm:$0xff]  ;;  %v70_v45 = vld [vmem:[%s3710_s0 + $0x88] sm:$0xff]  ;;  %v71_v47 = vld [vmem:[%s3710_s0 + $0x90] sm:$0xff] }
  0x1d   :  { %2161 = vmatprep.subr.mxu0 %v135_v20  ;;  %v111_v43 = vld [vmem:[%s3712_s2] sm:$0xff]  ;;  %v54_v48 = vld [vmem:[%s3710_s0 + $0x8] sm:$0xff]  ;;  %v72_v49 = vld [vmem:[%s3710_s0 + $0x98] sm:$0xff] }
  0x1e   :  { %2103 = vmatmul.mubr.msk.f32.gmra.mxu1 %vm222_vm0, %v65_v21  ;;  %2162 = vmatpush3.msra.mxu0 %v119_v22  ;;  %v109_v44 = vld [vmem:[%s3711_s1] sm:$0xff]  ;;  %v55_v50 = vld [vmem:[%s3710_s0 + $0x10] sm:$0xff]  ;;  %v56_v52 = vld [vmem:[%s3710_s0 + $0x18] sm:$0xff] }
  0x1f   :  { %533 = vmatprep.mubr.f32.mxu1 %v3722_v0  ;;  %2163 = vmatprep.subr.mxu0 %v134_v23  ;;  %v53_v46 = vld [vmem:[%s3710_s0] sm:$0xff]  ;;  %v74_v53 = vld [vmem:[%s3710_s0 + $0xa8] sm:$0xff]  ;;  %v75_v55 = vld [vmem:[%s3710_s0 + $0xb0] sm:$0xff] }
  0x20   :  { %2164 = vmatpush3.msra.mxu0 %v118_v25  ;;  %v73_v51 = vld [vmem:[%s3710_s0 + $0xa0] sm:$0xff]  ;;  %v58_v56 = vld [vmem:[%s3710_s0 + $0x28] sm:$0xff]  ;;  %v76_v57 = vld [vmem:[%s3710_s0 + $0xb8] sm:$0xff] }
  0x21   :  { %2165 = vmatprep.subr.mxu0 %v133_v26  ;;  %v57_v54 = vld [vmem:[%s3710_s0 + $0x20] sm:$0xff]  ;;  %v59_v58 = vld [vmem:[%s3710_s0 + $0x30] sm:$0xff]  ;;  %v60_v60 = vld [vmem:[%s3710_s0 + $0x38] sm:$0xff] }
  0x22   :  { %2104 = vmatmul.mubr.msk.f32.gmra.mxu1 %vm222_vm0, %v66_v27  ;;  %2166 = vmatpush3.msra.mxu0 %v117_v28  ;;  %v77_v59 = vld [vmem:[%s3710_s0 + $0xc0] sm:$0xff]  ;;  %v78_v61 = vld [vmem:[%s3710_s0 + $0xc8] sm:$0xff]  ;;  %v79_v63 = vld [vmem:[%s3710_s0 + $0xd0] sm:$0xff] }
  0x23   :  { %539 = vmatprep.mubr.f32.mxu1 %v3722_v0  ;;  %2167 = vmatprep.subr.mxu0 %v132_v29  ;;  %v61_v62 = vld [vmem:[%s3710_s0 + $0x40] sm:$0xff]  ;;  %v80_v1 = vld [vmem:[%s3710_s0 + $0xd8] sm:$0xff]  ;;  %v82_v3 = vld [vmem:[%s3710_s0 + $0xe8] sm:$0xff] }
  0x24   :  { %2168 = vmatpush3.msra.mxu0 %v116_v30  ;;  %v953_v5 = vld [vmem:[%s3719_s9 + $0x78] sm:$0xff]  ;;  %v952_v7 = vld [vmem:[%s3719_s9 + $0x70] sm:$0xff]  ;;  %v951_v8 = vld [vmem:[%s3719_s9 + $0x68] sm:$0xff] }
  0x25   :  { %2169 = vmatprep.subr.mxu0 %v131_v31  ;;  %v84_v6 = vld [vmem:[%s3710_s0 + $0xf8] sm:$0xff]  ;;  %v85_v9 = vld [vmem:[%s3710_s0 + $0x100] sm:$0xff]  ;;  %v86_v12 = vld [vmem:[%s3710_s0 + $0x108] sm:$0xff] }
  0x26   :  { %2105 = vmatmul.mubr.msk.f32.gmra.mxu1 %vm222_vm0, %v67_v32  ;;  %2170 = vmatpush3.msra.mxu0 %v115_v33  ;;  %v950_v10 = vld [vmem:[%s3719_s9 + $0x60] sm:$0xff]  ;;  %v949_v11 = vld [vmem:[%s3719_s9 + $0x58] sm:$0xff]  ;;  %v948_v13 = vld [vmem:[%s3719_s9 + $0x50] sm:$0xff] }
  0x27   :  { %545 = vmatprep.mubr.f32.mxu1 %v3722_v0  ;;  %2171 = vmatprep.subr.mxu0 %v130_v34  ;;  %v87_v14 = vld [vmem:[%s3710_s0 + $0x110] sm:$0xff]  ;;  %v947_v15 = vld [vmem:[%s3719_s9 + $0x48] sm:$0xff]  ;;  %v946_v16 = vld [vmem:[%s3719_s9 + $0x40] sm:$0xff] }
  0x28   :  { %2172 = vmatpush3.msra.mxu0 %v114_v35  ;;  %v88_v17 = vld [vmem:[%s3710_s0 + $0x118] sm:$0xff]  ;;  %v944_v19 = vld [vmem:[%s3719_s9 + $0x30] sm:$0xff]  ;;  %v89_v20 = vld [vmem:[%s3710_s0 + $0x120] sm:$0xff] }
  0x29   :  { %2173 = vmatprep.subr.mxu0 %v129_v36  ;;  %v945_v18 = vld [vmem:[%s3719_s9 + $0x38] sm:$0xff]  ;;  %v943_v21 = vld [vmem:[%s3719_s9 + $0x28] sm:$0xff]  ;;  %v942_v22 = vld [vmem:[%s3719_s9 + $0x20] sm:$0xff] }
  0x2a   :  { %2106 = vmatmul.mubr.msk.f32.gmra.mxu1 %vm222_vm0, %v68_v37  ;;  %2174 = vmatpush3.msra.mxu0 %v113_v38  ;;  %v90_v23 = vld [vmem:[%s3710_s0 + $0x128] sm:$0xff]  ;;  %v941_v24 = vld [vmem:[%s3719_s9 + $0x18] sm:$0xff]  ;;  %v940_v25 = vld [vmem:[%s3719_s9 + $0x10] sm:$0xff] }
  0x2b   :  { %551 = vmatprep.mubr.f32.mxu1 %v3722_v0  ;;  %2175 = vmatprep.subr.mxu0 %v128_v39  ;;  %v91_v26 = vld [vmem:[%s3710_s0 + $0x130] sm:$0xff]  ;;  %v939_v27 = vld [vmem:[%s3719_s9 + $0x8] sm:$0xff]  ;;  %v938_v28 = vld [vmem:[%s3719_s9] sm:$0xff] }
  0x2c   :  { %2176 = vmatpush3.msra.mxu0 %v112_v40  ;;  %v92_v29 = vld [vmem:[%s3710_s0 + $0x138] sm:$0xff]  ;;  %v93_v30 = vld [vmem:[%s3710_s0 + $0x140] sm:$0xff]  ;;  %v94_v31 = vld [vmem:[%s3710_s0 + $0x148] sm:$0xff] }
  0x2d   :  { %2177 = vmatprep.subr.mxu0 %v127_v41  ;;  %v95_v32 = vld [vmem:[%s3710_s0 + $0x150] sm:$0xff]  ;;  %v96_v33 = vld [vmem:[%s3710_s0 + $0x158] sm:$0xff]  ;;  %v97_v34 = vld [vmem:[%s3710_s0 + $0x160] sm:$0xff] }
  0x2e   :  { %2107 = vmatmul.mubr.msk.f32.gmra.mxu1 %vm222_vm0, %v69_v42  ;;  %2178 = vmatpush3.msra.mxu0 %v111_v43  ;;  %v98_v35 = vld [vmem:[%s3710_s0 + $0x168] sm:$0xff]  ;;  %v99_v36 = vld [vmem:[%s3710_s0 + $0x170] sm:$0xff]  ;;  %v100_v37 = vld [vmem:[%s3710_s0 + $0x178] sm:$0xff] }
  0x2f   :  { %557 = vmatprep.mubr.f32.mxu1 %v3722_v0  ;;  %215 = vmatmul.mubr.f32.vlgmr.msra.gmra.mxu0 %v109_v44  ;;  %v101_v38 = vld [vmem:[%s3710_s0 + $0x180] sm:$0xff]  ;;  %v102_v39 = vld [vmem:[%s3710_s0 + $0x188] sm:$0xff]  ;;  %v103_v40 = vld [vmem:[%s3710_s0 + $0x190] sm:$0xff] }
  0x30   :  { %421 = vmatprep.subr.mxu0 %v2635_v2  ;;  %455 = vmatprep.mubr.f32.mxu0 %v3722_v0  ;;  %v81_v2 = vld [vmem:[%s3710_s0 + $0xe0] sm:$0xff]  ;;  %v104_v41 = vld [vmem:[%s3710_s0 + $0x198] sm:$0xff]  ;;  %v106_v43 = vld [vmem:[%s3710_s0 + $0x1a8] sm:$0xff] }
  0x31   :  { %422 = vmatpush1.msra.mxu0 %v2644_v4  ;;  %v83_v4 = vld [vmem:[%s3710_s0 + $0xf0] sm:$0xff]  ;;  %v105_v42 = vld [vmem:[%s3710_s0 + $0x1a0] sm:$0xff] }
  0x32   :  { %2108 = vmatmul.mubr.msk.f32.gmra.mxu1 %vm222_vm0, %v70_v45  ;;  %2254 = vmatprep.subr.mxu0 %v953_v5  ;;  %v107_v44 = vld [vmem:[%s3710_s0 + $0x1b0] sm:$0xff]  ;;  %v108_v45 = vld [vmem:[%s3710_s0 + $0x1b8] sm:$0xff] }
  0x33   :  { %563 = vmatprep.mubr.f32.mxu1 %v3722_v0  ;;  %2091 = vmatmul.mubr.msk.f32.vlgmr.msra.gmra.mxu0 %vm222_vm0, %v53_v46 }
  0x34   :  { %461 = vmatprep.mubr.f32.mxu0 %v3722_v0  ;;  %2255 = vmatpush3.msra.mxu0 %v953_v5  ;;  %v2090_v5 = vld [vmem:[%s3713_s3] ss:$0 sm:$0xff] }
  0x35   :  { %2256 = vmatprep.subr.mxu0 %v952_v7 }
  0x36   :  { %2109 = vmatmul.mubr.msk.f32.gmra.mxu1 %vm222_vm0, %v71_v47  ;;  %2257 = vmatpush3.msra.mxu0 %v952_v7 }
  0x37   :  { %569 = vmatprep.mubr.f32.mxu1 %v3722_v0  ;;  %2092 = vmatmul.mubr.msk.f32.gmra.mxu0 %vm222_vm0, %v54_v48 }
  0x38   :  { %467 = vmatprep.mubr.f32.mxu0 %v3722_v0  ;;  %2258 = vmatprep.subr.mxu0 %v951_v8 }
  0x39   :  { %2259 = vmatpush3.msra.mxu0 %v951_v8 }
  0x3a   :  { %2110 = vmatmul.mubr.msk.f32.gmra.mxu1 %vm222_vm0, %v72_v49  ;;  %2260 = vmatprep.subr.mxu0 %v950_v10 }
  0x3b   :  { %575 = vmatprep.mubr.f32.mxu1 %v3722_v0  ;;  %2093 = vmatmul.mubr.msk.f32.gmra.mxu0 %vm222_vm0, %v55_v50 }
  0x3c   :  { %473 = vmatprep.mubr.f32.mxu0 %v3722_v0  ;;  %2261 = vmatpush3.msra.mxu0 %v950_v10 }
  0x3d   :  { %2262 = vmatprep.subr.mxu0 %v949_v11 }
  0x3e   :  { %2111 = vmatmul.mubr.msk.f32.gmra.mxu1 %vm222_vm0, %v73_v51  ;;  %2263 = vmatpush3.msra.mxu0 %v949_v11 }
  0x3f   :  { %581 = vmatprep.mubr.f32.mxu1 %v3722_v0  ;;  %2094 = vmatmul.mubr.msk.f32.gmra.mxu0 %vm222_vm0, %v56_v52 }
  0x40   :  { %479 = vmatprep.mubr.f32.mxu0 %v3722_v0  ;;  %2264 = vmatprep.subr.mxu0 %v948_v13 }
  0x41   :  { %2265 = vmatpush3.msra.mxu0 %v948_v13 }
  0x42   :  { %2112 = vmatmul.mubr.msk.f32.gmra.mxu1 %vm222_vm0, %v74_v53  ;;  %2266 = vmatprep.subr.mxu0 %v947_v15 }
  0x43   :  { %587 = vmatprep.mubr.f32.mxu1 %v3722_v0  ;;  %2095 = vmatmul.mubr.msk.f32.gmra.mxu0 %vm222_vm0, %v57_v54 }
  0x44   :  { %485 = vmatprep.mubr.f32.mxu0 %v3722_v0  ;;  %2267 = vmatpush3.msra.mxu0 %v947_v15 }
  0x45   :  { %2268 = vmatprep.subr.mxu0 %v946_v16 }
  0x46   :  { %2113 = vmatmul.mubr.msk.f32.gmra.mxu1 %vm222_vm0, %v75_v55  ;;  %2269 = vmatpush3.msra.mxu0 %v946_v16 }
  0x47   :  { %593 = vmatprep.mubr.f32.mxu1 %v3722_v0  ;;  %2096 = vmatmul.mubr.msk.f32.gmra.mxu0 %vm222_vm0, %v58_v56 }
  0x48   :  { %491 = vmatprep.mubr.f32.mxu0 %v3722_v0  ;;  %2270 = vmatprep.subr.mxu0 %v945_v18 }
  0x49   :  { %2271 = vmatpush3.msra.mxu0 %v945_v18 }
  0x4a   :  { %2114 = vmatmul.mubr.msk.f32.gmra.mxu1 %vm222_vm0, %v76_v57  ;;  %2272 = vmatprep.subr.mxu0 %v944_v19 }
  0x4b   :  { %599 = vmatprep.mubr.f32.mxu1 %v3722_v0  ;;  %2097 = vmatmul.mubr.msk.f32.gmra.mxu0 %vm222_vm0, %v59_v58 }
  0x4c   :  { %497 = vmatprep.mubr.f32.mxu0 %v3722_v0  ;;  %2273 = vmatpush3.msra.mxu0 %v944_v19 }
  0x4d   :  { %2274 = vmatprep.subr.mxu0 %v943_v21 }
  0x4e   :  { %2115 = vmatmul.mubr.msk.f32.gmra.mxu1 %vm222_vm0, %v77_v59  ;;  %2275 = vmatpush3.msra.mxu0 %v943_v21  ;;  %v2563_v59 = vmov 1966171168  }
  0x4f   :  { %605 = vmatprep.mubr.f32.mxu1 %v3722_v0  ;;  %2098 = vmatmul.mubr.msk.f32.gmra.mxu0 %vm222_vm0, %v60_v60  ;;  %v795_v60 = vunpack.c.l.s4 %v2563_v59 }
  0x50   :  { %503 = vmatprep.mubr.f32.mxu0 %v3722_v0  ;;  %2276 = vmatprep.subr.mxu0 %v942_v22 }
  0x51   :  { %2277 = vmatpush3.msra.mxu0 %v942_v22 }
  0x52   :  { %2116 = vmatmul.mubr.msk.f32.gmra.mxu1 %vm222_vm0, %v78_v61  ;;  %2278 = vmatprep.subr.mxu0 %v941_v24  ;;  %v797_v61 = vlaneseq }
  0x53   :  { %611 = vmatprep.mubr.f32.mxu1 %v3722_v0  ;;  %2099 = vmatmul.mubr.msk.f32.gmra.mxu0 %vm222_vm0, %v61_v62 }
  0x54   :  { %2279 = vmatpush3.msra.mxu0 %v941_v24 }
  0x55   :  { %2280 = vmatprep.subr.mxu0 %v940_v25 }
  0x56   :  { %2117 = vmatmul.mubr.msk.f32.gmra.mxu1 %vm222_vm0, %v79_v63  ;;  %2281 = vmatpush3.msra.mxu0 %v940_v25 }
  0x57   :  { %617 = vmatprep.mubr.f32.mxu1 %v3722_v0  ;;  %2282 = vmatprep.subr.mxu0 %v939_v27 }
  0x58   :  { %2283 = vmatpush3.msra.mxu0 %v939_v27 }
  0x59   :  { %2284 = vmatprep.subr.mxu0 %v938_v28 }
  0x5a   :  { %2118 = vmatmul.mubr.msk.f32.gmra.mxu1 %vm222_vm0, %v80_v1  ;;  %2285 = vmatpush3.msra.mxu0 %v938_v28  ;;  %v796_v1 = vunpack.c.0.s8 %v795_v60 }
  0x5b   :  { %623 = vmatprep.mubr.f32.mxu1 %v3722_v0 }
  0x5e   :  { %2119 = vmatmul.mubr.msk.f32.gmra.mxu1 %vm222_vm0, %v81_v2  ;;  %v3102_v2 = vshrl.u32 %v797_v61, 7 }
  0x5f   :  { %629 = vmatprep.mubr.f32.mxu1 %v3722_v0 }
  0x60   :  { %3727 = vst [vmem:[#allocation8_spill] sm:$0xff] %v3102_v2  ;;  %v3128_v19 = vsub.s32 0, %v3102_v2 }
  0x62   :  { %2120 = vmatmul.mubr.msk.f32.gmra.mxu1 %vm222_vm0, %v82_v3  ;;  %3728 = vst [vmem:[#allocation9_spill] sm:$0xff] %v3128_v19 }
  0x63   :  { %635 = vmatprep.mubr.f32.mxu1 %v3722_v0 }
  0x66   :  { %2121 = vmatmul.mubr.msk.f32.gmra.mxu1 %vm222_vm0, %v83_v4 }
  0x67   :  { %641 = vmatprep.mubr.f32.mxu1 %v3722_v0 }
  0x6a   :  { %2122 = vmatmul.mubr.msk.f32.gmra.mxu1 %vm222_vm0, %v84_v6 }
  0x6b   :  { %647 = vmatprep.mubr.f32.mxu1 %v3722_v0 }
  0x6e   :  { %2123 = vmatmul.mubr.msk.f32.gmra.mxu1 %vm222_vm0, %v85_v9  ;;  %v3112_v9 = vsub.s32 %v796_v1, %v3102_v2 }
  0x6f   :  { %653 = vmatprep.mubr.f32.mxu1 %v3722_v0 }
  0x72   :  { %2124 = vmatmul.mubr.msk.f32.gmra.mxu1 %vm222_vm0, %v86_v12 }
  0x73   :  { %659 = vmatprep.mubr.f32.mxu1 %v3722_v0 }
  0x76   :  { %2125 = vmatmul.mubr.msk.f32.gmra.mxu1 %vm222_vm0, %v87_v14 }
  0x77   :  { %665 = vmatprep.mubr.f32.mxu1 %v3722_v0 }
  0x7a   :  { %2126 = vmatmul.mubr.msk.f32.gmra.mxu1 %vm222_vm0, %v88_v17 }
  0x7b   :  { %671 = vmatprep.mubr.f32.mxu1 %v3722_v0 }
  0x7e   :  { %2127 = vmatmul.mubr.msk.f32.gmra.mxu1 %vm222_vm0, %v89_v20 }
  0x7f   :  { %677 = vmatprep.mubr.f32.mxu1 %v3722_v0 }
  0x82   :  { %2128 = vmatmul.mubr.msk.f32.gmra.mxu1 %vm222_vm0, %v90_v23 }
  0x83   :  { %683 = vmatprep.mubr.f32.mxu1 %v3722_v0 }
  0x86   :  { %2129 = vmatmul.mubr.msk.f32.gmra.mxu1 %vm222_vm0, %v91_v26 }
  0x87   :  { %689 = vmatprep.mubr.f32.mxu1 %v3722_v0 }
  0x8a   :  { %2130 = vmatmul.mubr.msk.f32.gmra.mxu1 %vm222_vm0, %v92_v29 }
  0x8b   :  { %695 = vmatprep.mubr.f32.mxu1 %v3722_v0 }
  0x8e   :  { %2131 = vmatmul.mubr.msk.f32.gmra.mxu1 %vm222_vm0, %v93_v30 }
  0x8f   :  { %701 = vmatprep.mubr.f32.mxu1 %v3722_v0 }
  0x92   :  { %2132 = vmatmul.mubr.msk.f32.gmra.mxu1 %vm222_vm0, %v94_v31 }
  0x93   :  { %707 = vmatprep.mubr.f32.mxu1 %v3722_v0 }
  0x96   :  { %2133 = vmatmul.mubr.msk.f32.gmra.mxu1 %vm222_vm0, %v95_v32 }
  0x97   :  { %713 = vmatprep.mubr.f32.mxu1 %v3722_v0 }
  0x9a   :  { %2134 = vmatmul.mubr.msk.f32.gmra.mxu1 %vm222_vm0, %v96_v33 }
  0x9b   :  { %719 = vmatprep.mubr.f32.mxu1 %v3722_v0 }
  0x9e   :  { %2135 = vmatmul.mubr.msk.f32.gmra.mxu1 %vm222_vm0, %v97_v34 }
  0x9f   :  { %725 = vmatprep.mubr.f32.mxu1 %v3722_v0 }
  0xa2   :  { %2136 = vmatmul.mubr.msk.f32.gmra.mxu1 %vm222_vm0, %v98_v35 }
  0xa3   :  { %731 = vmatprep.mubr.f32.mxu1 %v3722_v0 }
  0xa6   :  { %2137 = vmatmul.mubr.msk.f32.gmra.mxu1 %vm222_vm0, %v99_v36 }
  0xa7   :  { %737 = vmatprep.mubr.f32.mxu1 %v3722_v0 }
  0xaa   :  { %2138 = vmatmul.mubr.msk.f32.gmra.mxu1 %vm222_vm0, %v100_v37 }
  0xab   :  { %743 = vmatprep.mubr.f32.mxu1 %v3722_v0 }
  0xae   :  { %2139 = vmatmul.mubr.msk.f32.gmra.mxu1 %vm222_vm0, %v101_v38 }
  0xaf   :  { %749 = vmatprep.mubr.f32.mxu1 %v3722_v0 }
  0xb2   :  { %2140 = vmatmul.mubr.msk.f32.gmra.mxu1 %vm222_vm0, %v102_v39 }
  0xb3   :  { %755 = vmatprep.mubr.f32.mxu1 %v3722_v0 }
  0xb6   :  { %2141 = vmatmul.mubr.msk.f32.gmra.mxu1 %vm222_vm0, %v103_v40 }
  0xb7   :  { %761 = vmatprep.mubr.f32.mxu1 %v3722_v0 }
  0xba   :  { %2142 = vmatmul.mubr.msk.f32.gmra.mxu1 %vm222_vm0, %v104_v41 }
  0xbb   :  { %767 = vmatprep.mubr.f32.mxu1 %v3722_v0 }
  0xbe   :  { %2143 = vmatmul.mubr.msk.f32.gmra.mxu1 %vm222_vm0, %v105_v42 }
  0xbf   :  { %773 = vmatprep.mubr.f32.mxu1 %v3722_v0 }
  0xc2   :  { %2144 = vmatmul.mubr.msk.f32.gmra.mxu1 %vm222_vm0, %v106_v43 }
  0xc3   :  { %779 = vmatprep.mubr.f32.mxu1 %v3722_v0 }
  0xc6   :  { %2145 = vmatmul.mubr.msk.f32.gmra.mxu1 %vm222_vm0, %v107_v44 }
  0xc7   :  { %785 = vmatprep.mubr.f32.mxu1 %v3722_v0 }
  0xca   :  { %2146 = vmatmul.mubr.msk.f32.gmra.mxu1 %vm222_vm0, %v108_v45 }
  0xd2   :  { %v3072_v46 = vpop.f32.mrf.mxu1 }
  0xd4   :  { %v3074_v47 = vpop.f32.mrf.mxu1 }
  0xd6   :  { %v3076_v48 = vpop.f32.mrf.mxu1 }
  0xd8   :  { %v3078_v49 = vpop.f32.mrf.mxu1 }
  0xda   :  { %v3080_v50 = vpop.f32.mrf.mxu1 }
  0xdc   :  { %v3082_v51 = vpop.f32.mrf.mxu1 }
  0xde   :  { %v3084_v52 = vpop.f32.mrf.mxu1 }
  0xe0   :  { %v3086_v53 = vpop.f32.mrf.mxu1 }
  0xe2   :  { %v3088_v54 = vpop.f32.mrf.mxu1 }
  0xe4   :  { %v3090_v55 = vpop.f32.mrf.mxu1 }
  0xe6   :  { %v3092_v56 = vpop.f32.mrf.mxu1 }
  0xe8   :  { %v3094_v57 = vpop.f32.mrf.mxu1 }
  0xea   :  { %v3096_v58 = vpop.f32.mrf.mxu1 }
  0xec   :  { %v3098_v62 = vpop.f32.mrf.mxu1 }
  0xee   :  { %v3100_v63 = vpop.f32.mrf.mxu1 }
  0xef   :  { %v2179_v3 = vpop.f32.mrf.mxu0 }
  0xf0   :  { %v3104_v4 = vpop.f32.mrf.mxu1 }
  0xf1   :  { %v2180_v6 = vpop.f32.mrf.mxu0 }
  0xf2   :  { %v3109_v7 = vpop.f32.mrf.mxu1  ;;  %v2181_v8 = vadd.f32 %v2180_v6, %v2179_v3 }
  0xf3   :  { %v457_v10 = vpop.f32.mrf.mxu0 }
  0xf4   :  { %v3114_v11 = vpop.f32.mrf.mxu1  ;;  %v3116_v12 = vadd.f32 %v2181_v8, %v2090_v5 }
  0xf5   :  { %v3118_v13 = vpop.f32.mrf.mxu0 }
  0xf6   :  { %v3120_v14 = vpop.f32.mrf.mxu1  ;;  %v800_v15 = vrot.slane %v3116_v12, %v3112_v9 }
  0xf7   :  { %v463_v16 = vpop.f32.mrf.mxu0 }
  0xf8   :  { %v3124_v17 = vpop.f32.mrf.mxu1  ;;  %v816_v18 = vrot.slane %v800_v15, %v3112_v9  ;;  %v808_v40 = vcombine.high %v800_v15, %v800_v15 }
  0xf9   :  { %v3130_v20 = vpop.f32.mrf.mxu0 }
  0xfa   :  { %v3132_v21 = vpop.f32.mrf.mxu1  ;;  %v845_v22 = vrot.slane %v816_v18, %v3128_v19  ;;  %v830_v59 = vrot.slane %v808_v40, %v3112_v9 }
  0xfb   :  { %v469_v23 = vpop.f32.mrf.mxu0 }
  0xfc   :  { %v3135_v24 = vpop.f32.mrf.mxu1  ;;  %v882_v25 = vmul.f32 %v845_v22, %v457_v10  ;;  %v883_v26 = vmul.f32 %v845_v22, %v463_v16  ;;  %v884_v29 = vmul.f32 %v845_v22, %v469_v23  ;;  %v849_v6 = vrot.slane %v830_v59, %v3128_v19 }
  0xfd   :  { %v3137_v27 = vpop.f32.mrf.mxu0 }
  0xfe   :  { %v3139_v28 = vpop.f32.mrf.mxu1  ;;  %2286 = vmatprep.mubr.f32.mxu0 %v882_v25 }
  0xff   :  { %v475_v30 = vpop.f32.mrf.mxu0  ;;  %2287 = vmatmul.mubr.f32.vlgmr.msra.gmra.mxu0 %v883_v26 }
 0x100   :  { %v3141_v31 = vpop.f32.mrf.mxu1  ;;  %v885_v32 = vmul.f32 %v845_v22, %v475_v30  ;;  %2289 = vmatprep.mubr.f32.mxu0 %v884_v29  ;;  %v891_v30 = vmul.f32 %v849_v6, %v3072_v46 }
 0x101   :  { %v3143_v33 = vpop.f32.mrf.mxu0 }
 0x102   :  { %v3145_v34 = vpop.f32.mrf.mxu1 }
 0x103   :  { %v481_v35 = vpop.f32.mrf.mxu0  ;;  %2290 = vmatmul.mubr.f32.gmra.mxu0 %v885_v32  ;;  %v838_v32 = vcombine.high %v816_v18, %v816_v18  ;;  %v895_v18 = vmul.f32 %v849_v6, %v3088_v54 }
 0x104   :  { %v3147_v36 = vpop.f32.mrf.mxu1  ;;  %v886_v37 = vmul.f32 %v845_v22, %v481_v35  ;;  %v892_v35 = vmul.f32 %v849_v6, %v3076_v48 }
 0x105   :  { %v3149_v38 = vpop.f32.mrf.mxu0 }
 0x106   :  { %v3151_v39 = vpop.f32.mrf.mxu1  ;;  %2292 = vmatprep.mubr.f32.mxu0 %v886_v37 }
 0x107   :  { %v487_v41 = vpop.f32.mrf.mxu0 }
 0x108   :  { %v3153_v42 = vpop.f32.mrf.mxu1  ;;  %v887_v43 = vmul.f32 %v845_v22, %v487_v41  ;;  %v893_v41 = vmul.f32 %v849_v6, %v3080_v50 }
 0x109   :  { %3729 = vst [vmem:[#allocation10_spill] sm:$0xff] %v3153_v42  ;;  %v3155_v44 = vpop.f32.mrf.mxu0 }
 0x10a   :  { %v3157_v45 = vpop.f32.mrf.mxu1  ;;  %2293 = vmatmul.mubr.f32.gmra.mxu0 %v887_v43  ;;  %v853_v43 = vrot.slane %v838_v32, %v3128_v19 }
 0x10b   :  { %v493_v60 = vpop.f32.mrf.mxu0 }
 0x10c   :  { %v3160_v61 = vpop.f32.mrf.mxu1  ;;  %v888_v1 = vmul.f32 %v845_v22, %v493_v60  ;;  %v894_v60 = vmul.f32 %v849_v6, %v3084_v52  ;;  %v896_v48 = vmul.f32 %v853_v43, %v3092_v56  ;;  %v897_v50 = vmul.f32 %v853_v43, %v3096_v58 }
 0x10d   :  { %3730 = vst [vmem:[#allocation11_spill] sm:$0xff] %v3160_v61  ;;  %v3162_v3 = vpop.f32.mrf.mxu0  ;;  %v840_v52 = vcombine.high %v830_v59, %v830_v59  ;;  %v900_v54 = vmul.f32 %v853_v43, %v3120_v14  ;;  %v901_v58 = vmul.f32 %v853_v43, %v3132_v21 }
 0x10e   :  { %v3164_v5 = vpop.f32.mrf.mxu1  ;;  %2295 = vmatprep.mubr.f32.mxu0 %v888_v1 }
 0x10f   :  { %v499_v8 = vpop.f32.mrf.mxu0 }
 0x110   :  { %v3167_v10 = vpop.f32.mrf.mxu1  ;;  %v889_v15 = vmul.f32 %v849_v6, %v499_v8 }
 0x111   :  { %3731 = vst [vmem:[#allocation12_spill] sm:$0xff] %v3167_v10  ;;  %v3169_v16 = vpop.f32.mrf.mxu0  ;;  %v3359_v10 = vld [vmem:[%s3720_s10 + $0x30] sm:$0xff] }
 0x112   :  { %v607_v23 = vpop.f32.mrf.mxu1  ;;  %2296 = vmatmul.mubr.f32.gmra.mxu0 %v889_v15 }
 0x113   :  { %v505_v25 = vpop.f32.mrf.mxu0 }
 0x114   :  { %v3171_v26 = vpop.f32.mrf.mxu1  ;;  %v890_v29 = vmul.f32 %v849_v6, %v505_v25  ;;  %v898_v25 = vmul.f32 %v853_v43, %v3100_v63  ;;  %v857_v6 = vrot.slane %v840_v52, %v3128_v19  ;;  %v902_v63 = vmul.f32 %v853_v43, %v3139_v28 }
 0x115   :  { %3732 = vst [vmem:[#allocation13_spill] sm:$0xff] %v3171_v26 }
 0x116   :  { %v613_v22 = vpop.f32.mrf.mxu1  ;;  %2298 = vmatprep.mubr.f32.mxu0 %v890_v29  ;;  %v903_v14 = vmul.f32 %v857_v6, %v3145_v34  ;;  %v905_v28 = vmul.f32 %v857_v6, %v3157_v45  ;;  %v907_v34 = vmul.f32 %v857_v6, %v607_v23 }
 0x117   :  { %2299 = vmatmul.mubr.f32.gmra.mxu0 %v891_v30  ;;  %v899_v30 = vmul.f32 %v853_v43, %v3109_v7  ;;  %v793_v7 = vcombine.high %v3116_v12, %v3116_v12 }
 0x118   :  { %v3175_v37 = vpop.f32.mrf.mxu1  ;;  %2301 = vmatprep.mubr.f32.mxu0 %v892_v35 }
 0x119   :  { %3733 = vst [vmem:[#allocation14_spill] sm:$0xff] %v3175_v37  ;;  %v807_v21 = vrot.slane %v793_v7, %v3112_v9 }
 0x11a   :  { %v619_v40 = vpop.f32.mrf.mxu1 }
 0x11b   :  { %2302 = vmatmul.mubr.f32.gmra.mxu0 %v893_v41  ;;  %v823_v12 = vrot.slane %v807_v21, %v3112_v9 }
 0x11c   :  { %v3180_v1 = vpop.f32.mrf.mxu1  ;;  %2304 = vmatprep.mubr.f32.mxu0 %v894_v60  ;;  %v904_v60 = vmul.f32 %v857_v6, %v3151_v39  ;;  %v908_v39 = vmul.f32 %v857_v6, %v613_v22 }
 0x11d   :  { %3734 = vst [vmem:[#allocation15_spill] sm:$0xff] %v3180_v1 }
 0x11e   :  { %v625_v46 = vpop.f32.mrf.mxu1 }
 0x11f   :  { %2305 = vmatmul.mubr.f32.gmra.mxu0 %v895_v18 }
 0x120   :  { %v3184_v8 = vpop.f32.mrf.mxu1  ;;  %2307 = vmatprep.mubr.f32.mxu0 %v896_v48  ;;  %v906_v48 = vmul.f32 %v857_v6, %v3164_v5 }
 0x121   :  { %3735 = vst [vmem:[#allocation16_spill] sm:$0xff] %v3184_v8 }
 0x122   :  { %v631_v15 = vpop.f32.mrf.mxu1 }
 0x123   :  { %2308 = vmatmul.mubr.f32.gmra.mxu0 %v897_v50 }
 0x124   :  { %v3188_v29 = vpop.f32.mrf.mxu1  ;;  %2310 = vmatprep.mubr.f32.mxu0 %v898_v25 }
 0x125   :  { %3736 = vst [vmem:[#allocation17_spill] sm:$0xff] %v3188_v29 }
 0x126   :  { %v637_v32 = vpop.f32.mrf.mxu1 }
 0x127   :  { %2311 = vmatmul.mubr.f32.gmra.mxu0 %v899_v30  ;;  %v861_v30 = vrot.slane %v823_v12, %v3128_v19 }
 0x128   :  { %v3192_v56 = vpop.f32.mrf.mxu1  ;;  %2313 = vmatprep.mubr.f32.mxu0 %v900_v54  ;;  %v909_v54 = vmul.f32 %v857_v6, %v619_v40 }
 0x129   :  { %3737 = vst [vmem:[#allocation18_spill] sm:$0xff] %v3192_v56  ;;  %v911_v5 = vmul.f32 %v861_v30, %v631_v15 }
 0x12a   :  { %v643_v35 = vpop.f32.mrf.mxu1 }
 0x12b   :  { %2314 = vmatmul.mubr.f32.gmra.mxu0 %v901_v58  ;;  %v910_v58 = vmul.f32 %v861_v30, %v625_v46  ;;  %v913_v22 = vmul.f32 %v861_v30, %v643_v35 }
 0x12c   :  { %v3197_v41 = vpop.f32.mrf.mxu1  ;;  %2316 = vmatprep.mubr.f32.mxu0 %v902_v63 }
 0x12d   :  { %3738 = vst [vmem:[#allocation19_spill] sm:$0xff] %v3197_v41 }
 0x12e   :  { %v649_v59 = vpop.f32.mrf.mxu1 }
 0x12f   :  { %2317 = vmatmul.mubr.f32.gmra.mxu0 %v903_v14  ;;  %v912_v14 = vmul.f32 %v861_v30, %v637_v32 }
 0x130   :  { %v3203_v18 = vpop.f32.mrf.mxu1  ;;  %2319 = vmatprep.mubr.f32.mxu0 %v904_v60  ;;  %v809_v60 = vcombine.high %v807_v21, %v807_v21 }
 0x131   :  { %3739 = vst [vmem:[#allocation20_spill] sm:$0xff] %v3203_v18 }
 0x132   :  { %v655_v43 = vpop.f32.mrf.mxu1 }
 0x133   :  { %2320 = vmatmul.mubr.f32.gmra.mxu0 %v905_v28  ;;  %v915_v46 = vmul.f32 %v861_v30, %v655_v43  ;;  %v839_v43 = vcombine.high %v823_v12, %v823_v12 }
 0x134   :  { %v3208_v50 = vpop.f32.mrf.mxu1  ;;  %2322 = vmatprep.mubr.f32.mxu0 %v906_v48  ;;  %v914_v48 = vmul.f32 %v861_v30, %v649_v59 }
 0x135   :  { %3740 = vst [vmem:[#allocation21_spill] sm:$0xff] %v3208_v50 }
 0x136   :  { %v661_v25 = vpop.f32.mrf.mxu1 }
 0x137   :  { %2323 = vmatmul.mubr.f32.gmra.mxu0 %v907_v34  ;;  %v837_v34 = vrot.slane %v809_v60, %v3112_v9 }
 0x138   :  { %v3211_v52 = vpop.f32.mrf.mxu1  ;;  %2325 = vmatprep.mubr.f32.mxu0 %v908_v39  ;;  %v916_v39 = vmul.f32 %v861_v30, %v661_v25 }
 0x139   :  { %3741 = vst [vmem:[#allocation22_spill] sm:$0xff] %v3211_v52  ;;  %v865_v15 = vrot.slane %v837_v34, %v3128_v19 }
 0x13a   :  { %v667_v45 = vpop.f32.mrf.mxu1 }
 0x13b   :  { %2326 = vmatmul.mubr.f32.gmra.mxu0 %v909_v54  ;;  %v917_v21 = vmul.f32 %v865_v15, %v667_v45  ;;  %v869_v45 = vrot.slane %v839_v43, %v3128_v19 }
 0x13c   :  { %v3214_v63 = vpop.f32.mrf.mxu1  ;;  %2328 = vmatprep.mubr.f32.mxu0 %v910_v58 }
 0x13d   :  { %3742 = vst [vmem:[#allocation23_spill] sm:$0xff] %v3214_v63 }
 0x13e   :  { %v673_v7 = vpop.f32.mrf.mxu1 }
 0x13f   :  { %2329 = vmatmul.mubr.f32.gmra.mxu0 %v911_v5  ;;  %v918_v35 = vmul.f32 %v865_v15, %v673_v7 }
 0x140   :  { %v3216_v23 = vpop.f32.mrf.mxu1  ;;  %2331 = vmatprep.mubr.f32.mxu0 %v912_v14 }
 0x141   :  { %3743 = vst [vmem:[#allocation24_spill] sm:$0xff] %v3216_v23 }
 0x142   :  { %v679_v28 = vpop.f32.mrf.mxu1 }
 0x143   :  { %2332 = vmatmul.mubr.f32.gmra.mxu0 %v913_v22  ;;  %v919_v9 = vmul.f32 %v865_v15, %v679_v28 }
 0x144   :  { %v3219_v40 = vpop.f32.mrf.mxu1  ;;  %2334 = vmatprep.mubr.f32.mxu0 %v914_v48 }
 0x145   :  { %3744 = vst [vmem:[#allocation25_spill] sm:$0xff] %v3219_v40 }
 0x146   :  { %v685_v6 = vpop.f32.mrf.mxu1 }
 0x147   :  { %2335 = vmatmul.mubr.f32.gmra.mxu0 %v915_v46  ;;  %v920_v5 = vmul.f32 %v865_v15, %v685_v6 }
 0x148   :  { %v3222_v32 = vpop.f32.mrf.mxu1  ;;  %2337 = vmatprep.mubr.f32.mxu0 %v916_v39 }
 0x149   :  { %3745 = vst [vmem:[#allocation26_spill] sm:$0xff] %v3222_v32 }
 0x14a   :  { %v691_v54 = vpop.f32.mrf.mxu1 }
 0x14b   :  { %2338 = vmatmul.mubr.f32.gmra.mxu0 %v917_v21  ;;  %v921_v25 = vmul.f32 %v865_v15, %v691_v54 }
 0x14c   :  { %v3224_v58 = vpop.f32.mrf.mxu1  ;;  %2340 = vmatprep.mubr.f32.mxu0 %v918_v35 }
 0x14d   :  { %3746 = vst [vmem:[#allocation27_spill] sm:$0xff] %v3224_v58 }
 0x14e   :  { %v697_v59 = vpop.f32.mrf.mxu1 }
 0x14f   :  { %2341 = vmatmul.mubr.f32.gmra.mxu0 %v919_v9  ;;  %v922_v60 = vmul.f32 %v865_v15, %v697_v59 }
 0x150   :  { %v3226_v14 = vpop.f32.mrf.mxu1  ;;  %2343 = vmatprep.mubr.f32.mxu0 %v920_v5 }
 0x151   :  { %3747 = vst [vmem:[#allocation28_spill] sm:$0xff] %v3226_v14 }
 0x152   :  { %v703_v30 = vpop.f32.mrf.mxu1 }
 0x153   :  { %2344 = vmatmul.mubr.f32.gmra.mxu0 %v921_v25  ;;  %v923_v7 = vmul.f32 %v865_v15, %v703_v30 }
 0x154   :  { %v3228_v22 = vpop.f32.mrf.mxu1  ;;  %2346 = vmatprep.mubr.f32.mxu0 %v922_v60 }
 0x155   :  { %3748 = vst [vmem:[#allocation29_spill] sm:$0xff] %v3228_v22  ;;  %v3762_v22 = vmov 0.0  }
 0x156   :  { %v709_v48 = vpop.f32.mrf.mxu1 }
 0x157   :  { %v924_v46 = vmul.f32 %v869_v45, %v709_v48  ;;  %2347 = vmatmul.mubr.f32.gmra.mxu0 %v923_v7  ;;  %v841_v48 = vcombine.high %v837_v34, %v837_v34 }
 0x158   :  { %v3231_v28 = vpop.f32.mrf.mxu1 }
 0x159   :  { %3749 = vst [vmem:[#allocation30_spill] sm:$0xff] %v3231_v28  ;;  %2349 = vmatprep.mubr.f32.mxu0 %v924_v46 }
 0x15a   :  { %v715_v6 = vpop.f32.mrf.mxu1 }
 0x15b   :  { %v925_v39 = vmul.f32 %v869_v45, %v715_v6 }
 0x15c   :  { %v3233_v12 = vpop.f32.mrf.mxu1 }
 0x15d   :  { %3750 = vst [vmem:[#allocation31_spill] sm:$0xff] %v3233_v12  ;;  %2350 = vmatmul.mubr.f32.gmra.mxu0 %v925_v39 }
 0x15e   :  { %v721_v21 = vpop.f32.mrf.mxu1 }
 0x15f   :  { %v926_v54 = vmul.f32 %v869_v45, %v721_v21  ;;  %v873_v21 = vrot.slane %v841_v48, %v3128_v19 }
 0x160   :  { %v3235_v35 = vpop.f32.mrf.mxu1 }
 0x161   :  { %3751 = vst [vmem:[#allocation32_spill] sm:$0xff] %v3235_v35  ;;  %2352 = vmatprep.mubr.f32.mxu0 %v926_v54 }
 0x162   :  { %v727_v9 = vpop.f32.mrf.mxu1 }
 0x163   :  { %v927_v59 = vmul.f32 %v869_v45, %v727_v9 }
 0x164   :  { %v3237_v5 = vpop.f32.mrf.mxu1 }
 0x165   :  { %3752 = vst [vmem:[#allocation33_spill] sm:$0xff] %v3237_v5  ;;  %2353 = vmatmul.mubr.f32.gmra.mxu0 %v927_v59 }
 0x166   :  { %v733_v15 = vpop.f32.mrf.mxu1 }
 0x167   :  { %v928_v43 = vmul.f32 %v869_v45, %v733_v15 }
 0x168   :  { %v3239_v25 = vpop.f32.mrf.mxu1 }
 0x169   :  { %3753 = vst [vmem:[#allocation34_spill] sm:$0xff] %v3239_v25  ;;  %2355 = vmatprep.mubr.f32.mxu0 %v928_v43 }
 0x16a   :  { %v739_v30 = vpop.f32.mrf.mxu1 }
 0x16b   :  { %v929_v60 = vmul.f32 %v869_v45, %v739_v30 }
 0x16c   :  { %v3241_v7 = vpop.f32.mrf.mxu1 }
 0x16d   :  { %3754 = vst [vmem:[#allocation35_spill] sm:$0xff] %v3241_v7  ;;  %2356 = vmatmul.mubr.f32.gmra.mxu0 %v929_v60 }
 0x16e   :  { %v745_v46 = vpop.f32.mrf.mxu1 }
 0x16f   :  { %v930_v6 = vmul.f32 %v869_v45, %v745_v46 }
 0x170   :  { %v3243_v39 = vpop.f32.mrf.mxu1 }
 0x171   :  { %3755 = vst [vmem:[#allocation36_spill] sm:$0xff] %v3243_v39  ;;  %2358 = vmatprep.mubr.f32.mxu0 %v930_v6 }
 0x172   :  { %v751_v54 = vpop.f32.mrf.mxu1 }
 0x173   :  { %v931_v9 = vmul.f32 %v873_v21, %v751_v54 }
 0x174   :  { %v3246_v59 = vpop.f32.mrf.mxu1 }
 0x175   :  { %3756 = vst [vmem:[#allocation37_spill] sm:$0xff] %v3246_v59  ;;  %2359 = vmatmul.mubr.f32.gmra.mxu0 %v931_v9 }
 0x176   :  { %v757_v15 = vpop.f32.mrf.mxu1 }
 0x177   :  { %v932_v43 = vmul.f32 %v873_v21, %v757_v15 }
 0x178   :  { %v3248_v0 = vpop.f32.mrf.mxu1 }
 0x179   :  { %3757 = vst [vmem:[#allocation38_spill] sm:$0xff] %v3248_v0  ;;  %2361 = vmatprep.mubr.f32.mxu0 %v932_v43 }
 0x17a   :  { %v763_v30 = vpop.f32.mrf.mxu1 }
 0x17b   :  { %v933_v34 = vmul.f32 %v873_v21, %v763_v30 }
 0x17c   :  { %v3250_v60 = vpop.f32.mrf.mxu1 }
 0x17d   :  { %3758 = vst [vmem:[#allocation39_spill] sm:$0xff] %v3250_v60  ;;  %2362 = vmatmul.mubr.f32.gmra.mxu0 %v933_v34  ;;  %v3259_v34 = vpop.f32.mrf.mxu0 }
 0x17e   :  { %v769_v45 = vpop.f32.mrf.mxu1 }
 0x17f   :  { %v934_v46 = vmul.f32 %v873_v21, %v769_v45 }
 0x180   :  { %v3252_v2 = vpop.f32.mrf.mxu1 }
 0x181   :  { %3759 = vst [vmem:[#allocation40_spill] sm:$0xff] %v3252_v2  ;;  %2364 = vmatprep.mubr.f32.mxu0 %v934_v46 }
 0x182   :  { %v775_v48 = vpop.f32.mrf.mxu1 }
 0x183   :  { %v935_v6 = vmul.f32 %v873_v21, %v775_v48 }
 0x184   :  { %v3254_v54 = vpop.f32.mrf.mxu1 }
 0x185   :  { %3760 = vst [vmem:[#allocation41_spill] sm:$0xff] %v3254_v54  ;;  %2365 = vmatmul.mubr.f32.gmra.mxu0 %v935_v6 }
 0x186   :  { %v781_v9 = vpop.f32.mrf.mxu1 }
 0x187   :  { %v936_v15 = vmul.f32 %v873_v21, %v781_v9 }
 0x188   :  { %v3256_v19 = vpop.f32.mrf.mxu1 }
 0x189   :  { %3761 = vst [vmem:[#allocation42_spill] sm:$0xff] %v3256_v19  ;;  %2367 = vmatprep.mubr.f32.mxu0 %v936_v15 }
 0x18a   :  { %v787_v43 = vpop.f32.mrf.mxu1 }
 0x18b   :  { %v937_v30 = vmul.f32 %v873_v21, %v787_v43 }
 0x18d   :  { %2368 = vmatmul.mubr.f32.gmra.mxu0 %v937_v30 }
 0x18e   :  { %2021 = vmatprep.mubr.f32.mxu0 %v3762_v22 }
 0x1bf   :  { %v2288_v45 = vpop.f32.mrf.mxu0 }
 0x1c1   :  { %v1020_v39 = vpop.f32.mrf.mxu0 }
 0x1c2   :  { %v1299_v46 = vmax.f32 %v1020_v39, %v2288_v45 }
 0x1c3   :  { %v2291_v2 = vpop.f32.mrf.mxu0 }
 0x1c5   :  { %v1030_v48 = vpop.f32.mrf.mxu0 }
 0x1c6   :  { %v1300_v60 = vmax.f32 %v1299_v46, %v1030_v48 }
 0x1c8   :  { %v1301_v54 = vmax.f32 %v1300_v60, %v2291_v2 }
 0x1ca   :  { %v2294_v6 = vpop.f32.mrf.mxu0 }
 0x1cc   :  { %v1040_v7 = vpop.f32.mrf.mxu0 }
 0x1cd   :  { %v1302_v9 = vmax.f32 %v1301_v54, %v1040_v7 }
 0x1cf   :  { %v1303_v14 = vmax.f32 %v1302_v9, %v2294_v6 }
 0x1d2   :  { %v3261_v19 = vpop.f32.mrf.mxu0 }
 0x1d4   :  { %v1050_v15 = vpop.f32.mrf.mxu0 }
 0x1d5   :  { %v1304_v21 = vmax.f32 %v1303_v14, %v1050_v15 }
 0x1d7   :  { %v1305_v43 = vrot.slane %v1304_v21, 4  ;;  %v3263_v30 = vpop.f32.mrf.mxu0 }
 0x1d9   :  { %v1306_v22 = vmax.f32 %v1304_v21, %v1305_v43  ;;  %v3265_v0 = vpop.f32.mrf.mxu0 }
 0x1da   :  { %v1311_v59 = vmax.f32 %v3261_v19, %v3265_v0 }
 0x1db   :  { %v1307_v25 = vrot.slane %v1306_v22, 2  ;;  %v3269_v46 = vpop.f32.mrf.mxu0 }
 0x1dc   :  { %v1312_v60 = vmax.f32 %v1311_v59, %v3263_v30 }
 0x1dd   :  { %v1308_v54 = vmax.f32 %v1306_v22, %v1307_v25  ;;  %v3272_v9 = vpop.f32.mrf.mxu0 }
 0x1de   :  { %v1313_v58 = vmax.f32 %v1312_v60, %v3272_v9 }
 0x1df   :  { %v1309_v14 = vrot.slane %v1308_v54, 1  ;;  %v3275_v5 = vpop.f32.mrf.mxu0 }
 0x1e0   :  { %v1314_v21 = vmax.f32 %v1313_v58, %v3269_v46 }
 0x1e1   :  { %v1310_v43 = vmax.f32 %v1308_v54, %v1309_v14  ;;  %v3278_v32 = vpop.f32.mrf.mxu0 }
 0x1e2   :  { %v1315_v35 = vmax.f32 %v1314_v21, %v3278_v32 }
 0x1e3   :  { %v1395_v40 = vsub.f32 %v1020_v39, %v1310_v43  ;;  %v1396_v12 = vsub.f32 %v2288_v45, %v1310_v43  ;;  %v1397_v28 = vsub.f32 %v1030_v48, %v1310_v43  ;;  %v1398_v23 = vsub.f32 %v2291_v2, %v1310_v43  ;;  %v3281_v59 = vpop.f32.mrf.mxu0 }
 0x1e4   :  { %v1399_v25 = vsub.f32 %v1040_v7, %v1310_v43  ;;  %v1400_v22 = vsub.f32 %v2294_v6, %v1310_v43  ;;  %v1401_v63 = vsub.f32 %v1050_v15, %v1310_v43  ;;  %v1316_v60 = vmax.f32 %v1315_v35, %v3275_v5  ;;  %v1919_v15 = vld [vmem:[#allocation2 + $0xe8] sm:$0xff] }
 0x1e5   :  { %v1451_v52 = vmul.f32 1.442695, %v1395_v40  ;;  %v1453_v50 = vmul.f32 1.442695, %v1396_v12  ;;  %v1455_v18 = vmul.f32 1.442695, %v1397_v28  ;;  %v3284_v58 = vpop.f32.mrf.mxu0 }
 0x1e6   :  { %v1457_v54 = vmul.f32 1.442695, %v1398_v23  ;;  %v1323_v14 = vmax.f32 %v3284_v58, %v3281_v59  ;;  %v1459_v39 = vmul.f32 1.442695, %v1399_v25  ;;  %v1317_v45 = vrot.slane %v1316_v60, 4  ;;  %v1921_v12 = vld [vmem:[#allocation2 + $0xf8] sm:$0xff] }
 0x1e7   :  { %2378 = vpow2.f32 %v1451_v52  ;;  %v3288_v2 = vpop.f32.mrf.mxu0  ;;  %v1461_v7 = vmul.f32 1.442695, %v1400_v22  ;;  %v1463_v48 = vmul.f32 1.442695, %v1401_v63  ;;  %v1920_v52 = vld [vmem:[#allocation2 + $0xf0] sm:$0xff]  ;;  %1957 = vmatprep.subr.mxu0 %v1921_v12 }
 0x1e8   :  { %2380 = vpow2.f32 %v1453_v50  ;;  %v1318_v6 = vmax.f32 %v1316_v60, %v1317_v45  ;;  %v1918_v50 = vld [vmem:[#allocation2 + $0xe0] sm:$0xff]  ;;  %1958 = vmatpush1.msra.mxu0 %v1920_v52 }
 0x1e9   :  { %2382 = vpow2.f32 %v1455_v18  ;;  %v3290_v35 = vpop.f32.mrf.mxu0  ;;  %1959 = vmatprep.subr.mxu0 %v1919_v15  ;;  %v3324_v15 = vld [vmem:[%s3720_s10 + $0x10] sm:$0xff] }
 0x1ea   :  { %2384 = vpow2.f32 %v1457_v54  ;;  %v1324_v40 = vmax.f32 %v1323_v14, %v3290_v35  ;;  %v1319_v23 = vrot.slane %v1318_v6, 2  ;;  %1960 = vmatpush1.msra.mxu0 %v1918_v50 }
 0x1eb   :  { %2386 = vpow2.f32 %v1459_v39  ;;  %v3293_v28 = vpop.f32.mrf.mxu0  ;;  %v3307_v39 = vld [vmem:[%s3720_s10] sm:$0xff] }
 0x1ec   :  { %2388 = vpow2.f32 %v1461_v7  ;;  %v1325_v21 = vmax.f32 %v1324_v40, %v3288_v2  ;;  %v1320_v18 = vmax.f32 %v1318_v6, %v1319_v23  ;;  %v3313_v7 = vld [vmem:[%s3720_s10 + $0x8] sm:$0xff] }
 0x1ed   :  { %2390 = vpow2.f32 %v1463_v48  ;;  %v3296_v63 = vpop.f32.mrf.mxu0 }
 0x1ee   :  { %v1326_v43 = vmax.f32 %v1325_v21, %v3296_v63  ;;  %v1321_v25 = vrot.slane %v1320_v18, 1  ;;  %v3329_v21 = vld [vmem:[%s3720_s10 + $0x18] sm:$0xff] }
 0x1ef   :  { %v3299_v22 = vpop.f32.mrf.mxu0 }
 0x1f0   :  { %v1327_v60 = vmax.f32 %v1326_v43, %v3293_v28  ;;  %v1322_v54 = vmax.f32 %v1320_v18, %v1321_v25 }
 0x1f1   :  { %v3302_v14 = vpop.f32.mrf.mxu0 }
 0x1f2   :  { %v1328_v45 = vmax.f32 %v1327_v60, %v3302_v14  ;;  %v1402_v48 = vsub.f32 %v3261_v19, %v1322_v54  ;;  %v1403_v6 = vsub.f32 %v3265_v0, %v1322_v54  ;;  %v1404_v40 = vsub.f32 %v3263_v30, %v1322_v54 }
 0x1f3   :  { %v1405_v23 = vsub.f32 %v3272_v9, %v1322_v54  ;;  %v3319_v12 = vpop.f32.mrf.mxu0  ;;  %v1406_v19 = vsub.f32 %v3269_v46, %v1322_v54  ;;  %v1407_v0 = vsub.f32 %v3278_v32, %v1322_v54  ;;  %v1408_v30 = vsub.f32 %v3275_v5, %v1322_v54  ;;  %v3341_v32 = vld [vmem:[%s3720_s10 + $0x20] sm:$0xff] }
 0x1f4   :  { %v2379_v52 = vpop.eup %2378  ;;  %v1329_v9 = vrot.slane %v1328_v45, 4  ;;  %v1465_v43 = vmul.f32 1.442695, %v1402_v48  ;;  %v1467_v25 = vmul.f32 1.442695, %v1403_v6 }
 0x1f5   :  { %v2381_v50 = vpop.eup %2380  ;;  %v1570_v18 = vmul.f32 %v2379_v52, %v3307_v39  ;;  %v1469_v60 = vmul.f32 1.442695, %v1404_v40  ;;  %v3335_v41 = vpop.f32.mrf.mxu0  ;;  %v1471_v29 = vmul.f32 1.442695, %v1405_v23  ;;  %v1473_v54 = vmul.f32 1.442695, %v1406_v19 }
 0x1f6   :  { %v2383_v56 = vpop.eup %2382  ;;  %v1571_v1 = vmul.f32 %v2381_v50, %v3313_v7  ;;  %2392 = vpow2.f32 %v1465_v43  ;;  %v3350_v40 = vld [vmem:[%s3720_s10 + $0x28] sm:$0xff]  ;;  %v1330_v43 = vmax.f32 %v1328_v45, %v1329_v9 }
 0x1f7   :  { %v2385_v8 = vpop.eup %2384  ;;  %v1572_v5 = vmul.f32 %v2383_v56, %v3324_v15  ;;  %v1722_v46 = vmul.f32 %v1570_v18, %v3118_v13  ;;  %v3345_v48 = vpop.f32.mrf.mxu0  ;;  %2394 = vpow2.f32 %v1467_v25  ;;  %v1475_v56 = vmul.f32 1.442695, %v1407_v0 }
 0x1f8   :  { %v2387_v6 = vpop.eup %2386  ;;  %v1573_v23 = vmul.f32 %v2385_v8, %v3329_v21  ;;  %v1626_v52 = vadd.f32 %v1571_v1, %v1570_v18  ;;  %v1723_v50 = vmul.f32 %v1571_v1, %v3130_v20  ;;  %2396 = vpow2.f32 %v1469_v60 }
 0x1f9   :  { %v2389_v37 = vpop.eup %2388  ;;  %v1477_v13 = vmul.f32 1.442695, %v1408_v30  ;;  %v3354_v19 = vpop.f32.mrf.mxu0  ;;  %v1574_v61 = vmul.f32 %v2387_v6, %v3341_v32  ;;  %v1724_v18 = vmul.f32 %v1572_v5, %v3137_v27  ;;  %2398 = vpow2.f32 %v1471_v29 }
 0x1fa   :  { %v2391_v26 = vpop.eup %2390  ;;  %v1627_v8 = vadd.f32 %v1626_v52, %v1572_v5  ;;  %v1778_v20 = vadd.f32 %v1723_v50, %v1722_v46  ;;  %v1575_v1 = vmul.f32 %v2389_v37, %v3350_v40  ;;  %v1331_v0 = vrot.slane %v1330_v43, 2 }
 0x1fb   :  { %v3364_v30 = vpop.f32.mrf.mxu0  ;;  %v1725_v9 = vmul.f32 %v1573_v23, %v3143_v33  ;;  %2400 = vpow2.f32 %v1473_v54  ;;  %v1576_v60 = vmul.f32 %v2391_v26, %v3359_v10  ;;  %v1726_v27 = vmul.f32 %v1574_v61, %v3149_v38 }
 0x1fc   :  { %v1628_v45 = vadd.f32 %v1627_v8, %v1573_v23  ;;  %v1779_v25 = vadd.f32 %v1778_v20, %v1724_v18  ;;  %2402 = vpow2.f32 %v1475_v56  ;;  %v1332_v42 = vmax.f32 %v1330_v43, %v1331_v0 }
 0x1fd   :  { %v3368_v6 = vpop.f32.mrf.mxu0  ;;  %2404 = vpow2.f32 %v1477_v13  ;;  %v1727_v50 = vmul.f32 %v1575_v1, %v3155_v44  ;;  %v1728_v56 = vmul.f32 %v1576_v60, %v3162_v3  ;;  %v1335_v38 = vmax.f32 %v3299_v22, %v3335_v41 }
 0x1fe   :  { %v1629_v52 = vadd.f32 %v1628_v45, %v1574_v61  ;;  %v1780_v5 = vadd.f32 %v1779_v25, %v1725_v9  ;;  %v1333_v37 = vrot.slane %v1332_v42, 1  ;;  %v1917_v25 = vld [vmem:[#allocation2 + $0xd8] sm:$0xff] }
 0x1ff   :  { %v3371_v29 = vpop.f32.mrf.mxu0  ;;  %1961 = vmatprep.subr.mxu0 %v1917_v25 }
 0x200   :  { %v1630_v46 = vadd.f32 %v1629_v52, %v1575_v1  ;;  %v1781_v33 = vadd.f32 %v1780_v5, %v1726_v27  ;;  %v3374_v23 = vmax.f32 %v1332_v42, %v1333_v37  ;;  %v1914_v5 = vld [vmem:[#allocation2 + $0xc0] sm:$0xff] }
 0x201   :  { %v3376_v54 = vpop.f32.mrf.mxu0 }
 0x202   :  { %v1631_v26 = vadd.f32 %v1630_v46, %v1576_v60  ;;  %v1782_v43 = vadd.f32 %v1781_v33, %v1727_v50  ;;  %v1409_v61 = vsub.f32 %v3284_v58, %v3374_v23  ;;  %v1410_v13 = vsub.f32 %v3281_v59, %v3374_v23  ;;  %v1916_v60 = vld [vmem:[#allocation2 + $0xd0] sm:$0xff] }
 0x203   :  { %v1411_v44 = vsub.f32 %v3290_v35, %v3374_v23  ;;  %v1412_v42 = vsub.f32 %v3288_v2, %v3374_v23  ;;  %v3389_v8 = vpop.f32.mrf.mxu0  ;;  %v2393_v18 = vpop.eup %2392  ;;  %v1413_v1 = vsub.f32 %v3296_v63, %v3374_v23  ;;  %v1414_v58 = vsub.f32 %v3293_v28, %v3374_v23  ;;  %v1915_v63 = vld [vmem:[#allocation2 + $0xc8] sm:$0xff]  ;;  %1962 = vmatpush1.msra.mxu0 %v1916_v60 }
 0x204   :  { %v1632_v3 = vrot.slane %v1631_v26, 4  ;;  %v1783_v20 = vadd.f32 %v1782_v43, %v1728_v56  ;;  %v2395_v0 = vpop.eup %2394  ;;  %v1577_v59 = vmul.f32 %v2393_v18, %v3307_v39  ;;  %v1415_v35 = vsub.f32 %v3302_v14, %v3374_v23  ;;  %v1913_v14 = vld [vmem:[#allocation2 + $0xb8] sm:$0xff]  ;;  %1963 = vmatprep.subr.mxu0 %v1915_v63 }
 0x205   :  { %v1479_v45 = vmul.f32 1.442695, %v1409_v61  ;;  %v1481_v9 = vmul.f32 1.442695, %v1410_v13  ;;  %v3398_v2 = vpop.f32.mrf.mxu0  ;;  %v2397_v52 = vpop.eup %2396  ;;  %v1578_v27 = vmul.f32 %v2395_v0, %v3313_v7  ;;  %v1483_v46 = vmul.f32 1.442695, %v1411_v44  ;;  %1964 = vmatpush1.msra.mxu0 %v1914_v5 }
 0x206   :  { %v1579_v28 = vmul.f32 %v2397_v52, %v3324_v15  ;;  %v1729_v37 = vmul.f32 %v1577_v59, %v3169_v16  ;;  %v2399_v33 = vpop.eup %2398  ;;  %v1633_v23 = vadd.f32 %v1632_v3, %v1631_v26  ;;  %v1336_v61 = vmax.f32 %v1335_v38, %v3319_v12  ;;  %v1912_v13 = vld [vmem:[#allocation2 + $0xb0] sm:$0xff]  ;;  %1965 = vmatprep.subr.mxu0 %v1913_v14 }
 0x207   :  { %2406 = vpow2.f32 %v1479_v45  ;;  %v3403_v50 = vpop.f32.mrf.mxu0  ;;  %v1638_v56 = vadd.f32 %v1578_v27, %v1577_v59  ;;  %v1730_v43 = vmul.f32 %v1578_v27, %v3259_v34  ;;  %v1580_v0 = vmul.f32 %v2399_v33, %v3329_v21  ;;  %1966 = vmatpush1.msra.mxu0 %v1912_v13 }
 0x208   :  { %v2401_v18 = vpop.eup %2400  ;;  %2408 = vpow2.f32 %v1481_v9  ;;  %v1485_v16 = vmul.f32 1.442695, %v1412_v42  ;;  %v1784_v25 = vrot.slane %v1783_v20, 4  ;;  %v1731_v34 = vmul.f32 %v1579_v28, %v3074_v47 }
 0x209   :  { %v3408_v45 = vpop.f32.mrf.mxu0  ;;  %v2403_v44 = vpop.eup %2402  ;;  %v1581_v60 = vmul.f32 %v2401_v18, %v3341_v32  ;;  %v1639_v26 = vadd.f32 %v1638_v56, %v1579_v28  ;;  %v1790_v38 = vadd.f32 %v1730_v43, %v1729_v37  ;;  %2410 = vpow2.f32 %v1483_v46  ;;  %v1911_v18 = vld [vmem:[#allocation2 + $0xa8] sm:$0xff] }
 0x20a   :  { %v2405_v3 = vpop.eup %2404  ;;  %v1487_v59 = vmul.f32 1.442695, %v1413_v1  ;;  %v1634_v9 = vrot.slane %v1633_v23, 2  ;;  %v1337_v27 = vmax.f32 %v1336_v61, %v3354_v19  ;;  %v1347_v63 = vmax.f32 %v3376_v54, %v3371_v29  ;;  %1967 = vmatprep.subr.mxu0 %v1911_v18  ;;  %v1903_v18 = vld [vmem:[#allocation2 + $0x68] sm:$0xff] }
 0x20b   :  { %v3412_v52 = vpop.f32.mrf.mxu0  ;;  %v1640_v42 = vadd.f32 %v1639_v26, %v1580_v0  ;;  %v1582_v5 = vmul.f32 %v2403_v44, %v3350_v40  ;;  %v1732_v14 = vmul.f32 %v1580_v0, %v3078_v49  ;;  %v1791_v33 = vadd.f32 %v1790_v38, %v1731_v34  ;;  %v1910_v44 = vld [vmem:[#allocation2 + $0xa0] sm:$0xff] }
 0x20c   :  { %2412 = vpow2.f32 %v1485_v16  ;;  %v1785_v28 = vadd.f32 %v1784_v25, %v1783_v20  ;;  %v1583_v1 = vmul.f32 %v2405_v3, %v3359_v10  ;;  %v1733_v46 = vmul.f32 %v1581_v60, %v3082_v51  ;;  %v1909_v20 = vld [vmem:[#allocation2 + $0x98] sm:$0xff]  ;;  %v1908_v16 = vld [vmem:[#allocation2 + $0x90] sm:$0xff]  ;;  %1968 = vmatpush1.msra.mxu0 %v1910_v44 }
 0x20d   :  { %v3419_v47 = vpop.f32.mrf.mxu0  ;;  %v1641_v37 = vadd.f32 %v1640_v42, %v1581_v60  ;;  %v1792_v56 = vadd.f32 %v1791_v33, %v1732_v14  ;;  %2414 = vpow2.f32 %v1487_v59  ;;  %v1489_v43 = vmul.f32 1.442695, %v1414_v58  ;;  %v1907_v58 = vld [vmem:[#allocation2 + $0x88] sm:$0xff]  ;;  %1969 = vmatprep.subr.mxu0 %v1909_v20  ;;  %v1906_v59 = vld [vmem:[#allocation2 + $0x80] sm:$0xff] }
 0x20e   :  { %v1491_v61 = vmul.f32 1.442695, %v1415_v35  ;;  %v1338_v49 = vmax.f32 %v1337_v27, %v3345_v48  ;;  %v1348_v0 = vmax.f32 %v1347_v63, %v3398_v2  ;;  %v1635_v25 = vadd.f32 %v1634_v9, %v1633_v23  ;;  %1970 = vmatpush1.msra.mxu0 %v1908_v16  ;;  %v1905_v63 = vld [vmem:[#allocation2 + $0x78] sm:$0xff]  ;;  %v1902_v20 = vld [vmem:[#allocation2 + $0x60] sm:$0xff] }
 0x20f   :  { %v3423_v13 = vpop.f32.mrf.mxu0  ;;  %v1642_v26 = vadd.f32 %v1641_v37, %v1582_v5  ;;  %v1734_v3 = vmul.f32 %v1582_v5, %v3086_v53  ;;  %v1793_v51 = vadd.f32 %v1792_v56, %v1733_v46  ;;  %2416 = vpow2.f32 %v1489_v43  ;;  %1971 = vmatprep.subr.mxu0 %v1907_v58  ;;  %v1904_v46 = vld [vmem:[#allocation2 + $0x70] sm:$0xff] }
 0x210   :  { %2418 = vpow2.f32 %v1491_v61  ;;  %v1339_v34 = vmax.f32 %v1338_v49, %v3368_v6  ;;  %v1349_v38 = vmax.f32 %v1348_v0, %v3389_v8  ;;  %v1786_v42 = vrot.slane %v1785_v28, 2  ;;  %1972 = vmatpush1.msra.mxu0 %v1906_v59 }
 0x211   :  { %v3428_v60 = vpop.f32.mrf.mxu0  ;;  %v1643_v35 = vadd.f32 %v1642_v26, %v1583_v1  ;;  %v1735_v27 = vmul.f32 %v1583_v1, %v3090_v55  ;;  %v1794_v23 = vadd.f32 %v1793_v51, %v1734_v3  ;;  %v1636_v56 = vrot.slane %v1635_v25, 1  ;;  %1973 = vmatprep.subr.mxu0 %v1905_v63 }
 0x212   :  { %v1359_v53 = vmax.f32 %v3412_v52, %v3428_v60  ;;  %v1340_v33 = vmax.f32 %v1339_v34, %v3364_v30  ;;  %v1350_v37 = vmax.f32 %v1349_v38, %v3408_v45  ;;  %v3444_v16 = vadd.f32 %v1786_v42, %v1785_v28  ;;  %1974 = vmatpush1.msra.mxu0 %v1904_v46  ;;  %v1901_v34 = vld [vmem:[#allocation2 + $0x58] sm:$0xff] }
 0x213   :  { %v3435_v9 = vpop.f32.mrf.mxu0  ;;  %v1644_v14 = vrot.slane %v1643_v35, 4  ;;  %v1795_v43 = vadd.f32 %v1794_v23, %v1735_v27  ;;  %1975 = vmatprep.subr.mxu0 %v1903_v18  ;;  %v1637_v63 = vadd.f32 %v1636_v56, %v1635_v25 }
 0x214   :  { %3763 = vst [vmem:[#allocation43_spill] sm:$0xff] %v3435_v9  ;;  %v2407_v5 = vpop.eup %2406  ;;  %v1360_v61 = vmax.f32 %v1359_v53, %v3423_v13  ;;  %v1341_v49 = vrot.slane %v1340_v33, 4  ;;  %v1351_v0 = vmax.f32 %v1350_v37, %v3403_v50  ;;  %v1900_v53 = vld [vmem:[#allocation2 + $0x50] sm:$0xff]  ;;  %1976 = vmatpush1.msra.mxu0 %v1902_v20  ;;  %v1899_v37 = vld [vmem:[#allocation2 + $0x48] sm:$0xff] }
 0x215   :  { %v1584_v55 = vmul.f32 %v2407_v5, %v3307_v39  ;;  %v3440_v1 = vpop.f32.mrf.mxu0  ;;  %v2409_v44 = vpop.eup %2408  ;;  %v1645_v26 = vadd.f32 %v1644_v14, %v1643_v35  ;;  %v1796_v3 = vrot.slane %v1795_v43, 4  ;;  %1977 = vmatprep.subr.mxu0 %v1901_v34  ;;  %2420 = vrcp.f32 %v1637_v63 }
 0x216   :  { %v1585_v51 = vmul.f32 %v2409_v44, %v3313_v7  ;;  %v1361_v58 = vmax.f32 %v1360_v61, %v3440_v1  ;;  %v2411_v38 = vpop.eup %2410  ;;  %v1342_v23 = vmax.f32 %v1340_v33, %v1341_v49  ;;  %v1352_v35 = vmax.f32 %v1351_v0, %v3419_v47  ;;  %v1898_v49 = vld [vmem:[#allocation2 + $0x40] sm:$0xff]  ;;  %1978 = vmatpush1.msra.mxu0 %v1900_v53 }
 0x217   :  { %v1646_v27 = vrot.slane %v1645_v26, 2  ;;  %v1736_v59 = vmul.f32 %v1584_v55, %v3094_v57  ;;  %v1586_v28 = vmul.f32 %v2411_v38, %v3324_v15  ;;  %v3452_v14 = vpop.f32.mrf.mxu0  ;;  %v3454_v44 = vadd.f32 %v1796_v3, %v1795_v43  ;;  %1979 = vmatprep.subr.mxu0 %v1899_v37  ;;  %v1896_v3 = vld [vmem:[#allocation2 + $0x30] sm:$0xff] }
 0x218   :  { %v1650_v42 = vadd.f32 %v1585_v51, %v1584_v55  ;;  %v1737_v5 = vmul.f32 %v1585_v51, %v3098_v62  ;;  %v1343_v57 = vrot.slane %v1342_v23, 2  ;;  %v1353_v33 = vrot.slane %v1352_v35, 4  ;;  %v1897_v62 = vld [vmem:[#allocation2 + $0x38] sm:$0xff]  ;;  %1980 = vmatpush1.msra.mxu0 %v1898_v49 }
 0x219   :  { %v2413_v46 = vpop.eup %2412  ;;  %v1647_v61 = vadd.f32 %v1646_v27, %v1645_v26  ;;  %v1738_v56 = vmul.f32 %v1586_v28, %v3104_v4  ;;  %v3459_v55 = vmax.f32 %v1361_v58, %v3435_v9  ;;  %v1895_v4 = vld [vmem:[#allocation2 + $0x28] sm:$0xff]  ;;  %1981 = vmatprep.subr.mxu0 %v1897_v62 }
 0x21a   :  { %v1587_v18 = vmul.f32 %v2413_v46, %v3329_v21  ;;  %v1651_v25 = vadd.f32 %v1650_v42, %v1586_v28  ;;  %v2415_v0 = vpop.eup %2414  ;;  %v1802_v51 = vadd.f32 %v1737_v5, %v1736_v59  ;;  %v1344_v26 = vmax.f32 %v1342_v23, %v1343_v57  ;;  %v3463_v42 = vpop.f32.mrf.mxu0  ;;  %v1894_v59 = vld [vmem:[#allocation2 + $0x20] sm:$0xff]  ;;  %1982 = vmatpush1.msra.mxu0 %v1896_v3 }
 0x21b   :  { %v1648_v20 = vrot.slane %v1647_v61, 1  ;;  %v1354_v43 = vmax.f32 %v1352_v35, %v1353_v33  ;;  %v1588_v34 = vmul.f32 %v2415_v0, %v3341_v32  ;;  %v1798_v35 = vrot.slane %v3454_v44, 2  ;;  %1983 = vmatprep.subr.mxu0 %v1895_v4  ;;  %v1891_v0 = vld [vmem:[#allocation2 + $0x8] sm:$0xff] }
 0x21c   :  { %v1652_v38 = vadd.f32 %v1651_v25, %v1587_v18  ;;  %v1739_v27 = vmul.f32 %v1587_v18, %v3114_v11  ;;  %v2417_v58 = vpop.eup %2416  ;;  %v1803_v28 = vadd.f32 %v1802_v51, %v1738_v56  ;;  %v1345_v46 = vrot.slane %v1344_v26, 1  ;;  %v1893_v11 = vld [vmem:[#allocation2 + $0x18] sm:$0xff]  ;;  %v1892_v18 = vld [vmem:[#allocation2 + $0x10] sm:$0xff]  ;;  %1984 = vmatpush1.msra.mxu0 %v1894_v59 }
 0x21d   :  { %v1649_v53 = vadd.f32 %v1648_v20, %v1647_v61  ;;  %v1355_v9 = vrot.slane %v1354_v43, 2  ;;  %v2419_v23 = vpop.eup %2418  ;;  %v1589_v63 = vmul.f32 %v2417_v58, %v3350_v40  ;;  %v1740_v37 = vmul.f32 %v1588_v34, %v3124_v17  ;;  %1985 = vmatprep.subr.mxu0 %v1893_v11 }
 0x21e   :  { %v1653_v5 = vadd.f32 %v1652_v38, %v1588_v34  ;;  %v1590_v57 = vmul.f32 %v2419_v23, %v3359_v10  ;;  %v1804_v33 = vadd.f32 %v1803_v28, %v1739_v27  ;;  %v1346_v49 = vmax.f32 %v1344_v26, %v1345_v46  ;;  %v1890_v26 = vld [vmem:[#allocation2] sm:$0xff]  ;;  %1986 = vmatpush1.msra.mxu0 %v1892_v18  ;;  %v3484_v23 = vpop.f32.mrf.mxu0 }
 0x21f   :  { %v1363_v61 = vmax.f32 %v3459_v55, %v3463_v42  ;;  %2422 = vrcp.f32 %v1649_v53  ;;  %v1741_v56 = vmul.f32 %v1589_v63, %v3135_v24  ;;  %v1356_v62 = vmax.f32 %v1354_v43, %v1355_v9  ;;  %1987 = vmatprep.subr.mxu0 %v1891_v0 }
 0x220   :  { %v1654_v25 = vadd.f32 %v1653_v5, %v1589_v63  ;;  %v1742_v17 = vmul.f32 %v1590_v57, %v3141_v31  ;;  %v1805_v20 = vadd.f32 %v1804_v33, %v1740_v37  ;;  %v1416_v51 = vsub.f32 %v3299_v22, %v1346_v49  ;;  %1988 = vmatpush1.msra.mxu0 %v1890_v26 }
 0x221   :  { %v1417_v3 = vsub.f32 %v3335_v41, %v1346_v49  ;;  %v1418_v55 = vsub.f32 %v3319_v12, %v1346_v49  ;;  %v1419_v38 = vsub.f32 %v3354_v19, %v1346_v49  ;;  %v1420_v27 = vsub.f32 %v3345_v48, %v1346_v49 }
 0x222   :  { %v1655_v34 = vadd.f32 %v1654_v25, %v1590_v57  ;;  %v1806_v24 = vadd.f32 %v1805_v20, %v1741_v56  ;;  %v1421_v9 = vsub.f32 %v3368_v6, %v1346_v49  ;;  %v1422_v31 = vsub.f32 %v3364_v30, %v1346_v49  ;;  %v2421_v63 = vpop.eup %2420 }
 0x223   :  { %v1493_v43 = vmul.f32 1.442695, %v1416_v51  ;;  %v1495_v4 = vmul.f32 1.442695, %v1417_v3  ;;  %v1497_v41 = vmul.f32 1.442695, %v1418_v55  ;;  %v1799_v48 = vadd.f32 %v1798_v35, %v3454_v44 }
 0x224   :  { %v1656_v22 = vrot.slane %v1655_v34, 4  ;;  %v1357_v58 = vrot.slane %v1356_v62, 1  ;;  %v3480_v53 = vadd.f32 %v1806_v24, %v1742_v17  ;;  %v1499_v12 = vmul.f32 1.442695, %v1419_v38 }
 0x225   :  { %2424 = vpow2.f32 %v1493_v43  ;;  %v1501_v19 = vmul.f32 1.442695, %v1420_v27  ;;  %v1503_v46 = vmul.f32 1.442695, %v1421_v9  ;;  %v1505_v6 = vmul.f32 1.442695, %v1422_v31 }
 0x226   :  { %v1657_v28 = vadd.f32 %v1656_v22, %v1655_v34  ;;  %2426 = vpow2.f32 %v1495_v4  ;;  %v1358_v30 = vmax.f32 %v1356_v62, %v1357_v58  ;;  %v1364_v59 = vmax.f32 %v1363_v61, %v3452_v14  ;;  %v3492_v61 = vpop.f32.mrf.mxu0 }
 0x227   :  { %2428 = vpow2.f32 %v1497_v41  ;;  %v1788_v5 = vrot.slane %v3444_v16, 1  ;;  %v1800_v18 = vrot.slane %v1799_v48, 1  ;;  %v1808_v26 = vrot.slane %v3480_v53, 4 }
 0x228   :  { %2430 = vpow2.f32 %v1499_v12  ;;  %v1423_v37 = vsub.f32 %v3376_v54, %v1358_v30  ;;  %v1424_v11 = vsub.f32 %v3371_v29, %v1358_v30  ;;  %v1658_v44 = vrot.slane %v1657_v28, 2  ;;  %v3496_v17 = vpop.f32.mrf.mxu0 }
 0x229   :  { %2432 = vpow2.f32 %v1501_v19  ;;  %v1425_v35 = vsub.f32 %v3398_v2, %v1358_v30  ;;  %v1426_v57 = vsub.f32 %v3389_v8, %v1358_v30  ;;  %v1427_v33 = vsub.f32 %v3408_v45, %v1358_v30 }
 0x22a   :  { %2434 = vpow2.f32 %v1503_v46  ;;  %v1365_v49 = vrot.slane %v1364_v59, 4  ;;  %v1428_v25 = vsub.f32 %v3403_v50, %v1358_v30  ;;  %v1507_v56 = vmul.f32 1.442695, %v1423_v37  ;;  %v3500_v38 = vpop.f32.mrf.mxu0 }
 0x22b   :  { %2436 = vpow2.f32 %v1505_v6  ;;  %v1509_v62 = vmul.f32 1.442695, %v1424_v11  ;;  %v1429_v29 = vsub.f32 %v3419_v47, %v1358_v30  ;;  %v1511_v0 = vmul.f32 1.442695, %v1425_v35 }
 0x22c   :  { %v2423_v54 = vpop.eup %2422  ;;  %v1659_v2 = vadd.f32 %v1658_v44, %v1657_v28  ;;  %2438 = vpow2.f32 %v1507_v56  ;;  %v1513_v8 = vmul.f32 1.442695, %v1426_v57  ;;  %v1789_v20 = vadd.f32 %v1788_v5, %v3444_v16 }
 0x22d   :  { %2440 = vpow2.f32 %v1509_v62  ;;  %v1515_v45 = vmul.f32 1.442695, %v1427_v33  ;;  %v1366_v51 = vmax.f32 %v1364_v59, %v1365_v49  ;;  %v1801_v3 = vadd.f32 %v1800_v18, %v1799_v48  ;;  %v3503_v22 = vpop.f32.mrf.mxu0  ;;  %v3765_v18 = vld [vmem:[#allocation11_spill] sm:$0xff] }
 0x22e   :  { %v1517_v50 = vmul.f32 1.442695, %v1428_v25  ;;  %v1882_v34 = vmul.f32 %v2421_v63, %v1789_v20  ;;  %2442 = vpow2.f32 %v1511_v0  ;;  %v1519_v55 = vmul.f32 1.442695, %v1429_v29  ;;  %v3764_v63 = vld [vmem:[#allocation10_spill] sm:$0xff]  ;;  %v3766_v0 = vld [vmem:[#allocation12_spill] sm:$0xff] }
 0x22f   :  { %v1367_v47 = vrot.slane %v1366_v51, 2  ;;  %v1883_v27 = vmul.f32 %v2423_v54, %v1801_v3  ;;  %2444 = vpow2.f32 %v1513_v8  ;;  %v1660_v31 = vrot.slane %v1659_v2, 1  ;;  %v3517_v57 = vpop.f32.mrf.mxu0 }
 0x230   :  { %2446 = vpow2.f32 %v1515_v45  ;;  %v1371_v58 = vmax.f32 %v3492_v61, %v3484_v23  ;;  %v1809_v48 = vadd.f32 %v1808_v26, %v3480_v53 }
 0x231   :  { %v1368_v43 = vmax.f32 %v1366_v51, %v1367_v47  ;;  %2448 = vpow2.f32 %v1517_v50  ;;  %v3509_v12 = vsel %vm1942_vm1, %v1883_v27, %v1882_v34  ;;  %v1661_v11 = vadd.f32 %v1660_v31, %v1659_v2  ;;  %v3767_v34 = vld [vmem:[#allocation13_spill] sm:$0xff] }
 0x232   :  { %v2425_v24 = vpop.eup %2424  ;;  %2450 = vpow2.f32 %v1519_v55  ;;  %v1372_v35 = vmax.f32 %v1371_v58, %v3500_v38  ;;  %v1810_v56 = vrot.slane %v1809_v48, 2 }
 0x233   :  { %v2427_v9 = vpop.eup %2426  ;;  %v1591_v16 = vmul.f32 %v2425_v24, %v3307_v39  ;;  %v1369_v44 = vrot.slane %v1368_v43, 1  ;;  %2452 = vrcp.f32 %v1661_v11 }
 0x234   :  { %v2429_v4 = vpop.eup %2428  ;;  %v1592_v41 = vmul.f32 %v2427_v9, %v3313_v7  ;;  %v1373_v3 = vmax.f32 %v1372_v35, %v3496_v17  ;;  %v1811_v24 = vadd.f32 %v1810_v56, %v1809_v48  ;;  %v3771_v35 = vld [vmem:[#allocation15_spill] sm:$0xff] }
 0x235   :  { %v2431_v19 = vpop.eup %2430  ;;  %v1593_v28 = vmul.f32 %v2429_v4, %v3324_v15  ;;  %v1743_v46 = vmul.f32 %v1591_v16, %v3147_v36  ;;  %v3521_v62 = vpop.f32.mrf.mxu0  ;;  %v3526_v51 = vmax.f32 %v1368_v43, %v1369_v44  ;;  %v3768_v43 = vld [vmem:[#allocation14_spill] sm:$0xff] }
 0x236   :  { %v2433_v6 = vpop.eup %2432  ;;  %v1594_v30 = vmul.f32 %v2431_v19, %v3329_v21  ;;  %v1662_v59 = vadd.f32 %v1592_v41, %v1591_v16  ;;  %v1744_v5 = vmul.f32 %v1592_v41, %v3764_v63  ;;  %v1374_v31 = vmax.f32 %v1373_v3, %v3517_v57  ;;  %v3770_v63 = vld [vmem:[#allocation17_spill] sm:$0xff]  ;;  %v3773_v3 = vld [vmem:[#allocation19_spill] sm:$0xff] }
 0x237   :  { %v2435_v37 = vpop.eup %2434  ;;  %v1595_v53 = vmul.f32 %v2433_v6, %v3341_v32  ;;  %v1745_v36 = vmul.f32 %v1593_v28, %v3765_v18  ;;  %v3533_v16 = vpop.f32.mrf.mxu0  ;;  %v1430_v48 = vsub.f32 %v3412_v52, %v3526_v51  ;;  %v1431_v52 = vsub.f32 %v3428_v60, %v3526_v51 }
 0x238   :  { %v2437_v33 = vpop.eup %2436  ;;  %v1663_v49 = vadd.f32 %v1662_v59, %v1593_v28  ;;  %v1814_v25 = vadd.f32 %v1744_v5, %v1743_v46  ;;  %v1596_v54 = vmul.f32 %v2435_v37, %v3350_v40  ;;  %v1746_v2 = vmul.f32 %v1594_v30, %v3766_v0  ;;  %v3769_v28 = vld [vmem:[#allocation16_spill] sm:$0xff] }
 0x239   :  { %v2439_v20 = vpop.eup %2438  ;;  %v1597_v45 = vmul.f32 %v2437_v33, %v3359_v10  ;;  %v1747_v55 = vmul.f32 %v1595_v53, %v3767_v34  ;;  %v1521_v34 = vmul.f32 1.442695, %v1430_v48 }
 0x23a   :  { %v1664_v29 = vadd.f32 %v1663_v49, %v1594_v30  ;;  %v1815_v8 = vadd.f32 %v1814_v25, %v1745_v36  ;;  %v2441_v26 = vpop.eup %2440  ;;  %v1598_v27 = vmul.f32 %v2439_v20, %v3307_v39  ;;  %v1748_v58 = vmul.f32 %v1596_v54, %v3768_v43 }
 0x23b   :  { %v1599_v9 = vmul.f32 %v2441_v26, %v3313_v7  ;;  %v2443_v4 = vpop.eup %2442  ;;  %v1749_v33 = vmul.f32 %v1597_v45, %v3771_v35  ;;  %2454 = vpow2.f32 %v1521_v34 }
 0x23c   :  { %v1665_v50 = vadd.f32 %v1664_v29, %v1595_v53  ;;  %v1816_v47 = vadd.f32 %v1815_v8, %v1746_v2  ;;  %v1750_v46 = vmul.f32 %v1598_v27, %v3769_v28  ;;  %v2445_v6 = vpop.eup %2444  ;;  %v1600_v30 = vmul.f32 %v2443_v4, %v3324_v15  ;;  %v3772_v15 = vld [vmem:[#allocation18_spill] sm:$0xff] }
 0x23d   :  { %v1674_v59 = vadd.f32 %v1599_v9, %v1598_v27  ;;  %v1751_v5 = vmul.f32 %v1599_v9, %v3770_v63  ;;  %v3541_v37 = vpop.f32.mrf.mxu0  ;;  %v2447_v11 = vpop.eup %2446  ;;  %v1601_v49 = vmul.f32 %v2445_v6, %v3329_v21  ;;  %v1812_v8 = vrot.slane %v1811_v24, 1  ;;  %v3774_v9 = vld [vmem:[#allocation20_spill] sm:$0xff] }
 0x23e   :  { %v1666_v41 = vadd.f32 %v1665_v50, %v1596_v54  ;;  %v1817_v19 = vadd.f32 %v1816_v47, %v1747_v55  ;;  %v2449_v18 = vpop.eup %2448  ;;  %v1602_v36 = vmul.f32 %v2447_v11, %v3341_v32  ;;  %v1752_v56 = vmul.f32 %v1600_v30, %v3772_v15  ;;  %v3776_v11 = vld [vmem:[#allocation22_spill] sm:$0xff] }
 0x23f   :  { %v1675_v25 = vadd.f32 %v1674_v59, %v1600_v30  ;;  %v1826_v54 = vadd.f32 %v1751_v5, %v1750_v46  ;;  %v2451_v29 = vpop.eup %2450  ;;  %v1603_v20 = vmul.f32 %v2449_v18, %v3350_v40  ;;  %v1753_v26 = vmul.f32 %v1601_v49, %v3773_v3  ;;  %v3551_v50 = vpop.f32.mrf.mxu0  ;;  %v3775_v46 = vld [vmem:[#allocation21_spill] sm:$0xff] }
 0x240   :  { %v1667_v44 = vadd.f32 %v1666_v41, %v1597_v45  ;;  %v1818_v53 = vadd.f32 %v1817_v19, %v1748_v58  ;;  %v1375_v55 = vmax.f32 %v1374_v31, %v3503_v22  ;;  %v1604_v47 = vmul.f32 %v2451_v29, %v3359_v10  ;;  %v2453_v59 = vpop.eup %2452 }
 0x241   :  { %v1676_v45 = vadd.f32 %v1675_v25, %v1601_v49  ;;  %v1827_v21 = vadd.f32 %v1826_v54, %v1752_v56  ;;  %v1754_v4 = vmul.f32 %v1602_v36, %v3774_v9  ;;  %v1432_v40 = vsub.f32 %v3423_v13, %v3526_v51 }
 0x242   :  { %v1668_v0 = vrot.slane %v1667_v44, 4  ;;  %v1819_v2 = vadd.f32 %v1818_v53, %v1749_v33  ;;  %v1523_v58 = vmul.f32 1.442695, %v1431_v52  ;;  %v1813_v19 = vadd.f32 %v1812_v8, %v1811_v24 }
 0x243   :  { %v1677_v27 = vadd.f32 %v1676_v45, %v1602_v36  ;;  %v1828_v41 = vadd.f32 %v1827_v21, %v1753_v26  ;;  %v1755_v6 = vmul.f32 %v1603_v20, %v3775_v46  ;;  %v1376_v31 = vmax.f32 %v1375_v55, %v3533_v16 }
 0x244   :  { %v1669_v32 = vadd.f32 %v1668_v0, %v1667_v44  ;;  %v1820_v63 = vrot.slane %v1819_v2, 4  ;;  %v1383_v5 = vmax.f32 %v3521_v62, %v3551_v50  ;;  %v1756_v44 = vmul.f32 %v1604_v47, %v3776_v11 }
 0x245   :  { %v3556_v60 = vpop.f32.mrf.mxu0  ;;  %v1678_v28 = vadd.f32 %v1677_v27, %v1603_v20  ;;  %v1829_v30 = vadd.f32 %v1828_v41, %v1754_v4  ;;  %v1377_v13 = vrot.slane %v1376_v31, 4  ;;  %v1433_v53 = vsub.f32 %v3440_v1, %v3526_v51  ;;  %v3777_v1 = vld [vmem:[#allocation43_spill] sm:$0xff] }
 0x246   :  { %v1670_v43 = vrot.slane %v1669_v32, 2  ;;  %2456 = vpow2.f32 %v1523_v58  ;;  %v1384_v49 = vmax.f32 %v1383_v5, %v3541_v37  ;;  %v1884_v56 = vmul.f32 %v2453_v59, %v1813_v19 }
 0x247   :  { %v1679_v48 = vadd.f32 %v1678_v28, %v1604_v47  ;;  %v1830_v35 = vadd.f32 %v1829_v30, %v1755_v6  ;;  %v3565_v33 = vpop.f32.mrf.mxu0  ;;  %v1378_v25 = vmax.f32 %v1376_v31, %v1377_v13  ;;  %v1821_v29 = vadd.f32 %v1820_v63, %v1819_v2 }
 0x248   :  { %v1671_v10 = vadd.f32 %v1670_v43, %v1669_v32  ;;  %v1525_v0 = vmul.f32 1.442695, %v1432_v40  ;;  %v1385_v52 = vmax.f32 %v1384_v49, %v3565_v33  ;;  %v1434_v45 = vsub.f32 %v3777_v1, %v3526_v51  ;;  %v2455_v46 = vpop.eup %2454 }
 0x249   :  { %v1680_v18 = vrot.slane %v1679_v48, 4  ;;  %v1831_v36 = vadd.f32 %v1830_v35, %v1756_v44  ;;  %v1379_v20 = vrot.slane %v1378_v25, 2  ;;  %v1527_v55 = vmul.f32 1.442695, %v1433_v53 }
 0x24a   :  { %v1672_v24 = vrot.slane %v1671_v10, 1  ;;  %v1386_v34 = vmax.f32 %v1385_v52, %v3556_v60  ;;  %v1822_v2 = vrot.slane %v1821_v29, 2  ;;  %v1945_v47 = vsel %vm1944_vm2, %v1884_v56, %v3509_v12 }
 0x24b   :  { %v1681_v8 = vadd.f32 %v1680_v18, %v1679_v48  ;;  %v1832_v21 = vrot.slane %v1831_v36, 4  ;;  %v1380_v32 = vmax.f32 %v1378_v25, %v1379_v20  ;;  %v1435_v9 = vsub.f32 %v3463_v42, %v3526_v51 }
 0x24c   :  { %v1673_v54 = vadd.f32 %v1672_v24, %v1671_v10  ;;  %v1529_v19 = vmul.f32 1.442695, %v1434_v45  ;;  %v1823_v28 = vadd.f32 %v1822_v2, %v1821_v29  ;;  %v1436_v63 = vsub.f32 %v3452_v14, %v3526_v51 }
 0x24d   :  { %v3570_v15 = vpop.f32.mrf.mxu0  ;;  %v1682_v26 = vrot.slane %v1681_v8, 2  ;;  %v1381_v4 = vrot.slane %v1380_v32, 1  ;;  %v1833_v40 = vadd.f32 %v1832_v21, %v1831_v36  ;;  %v1531_v30 = vmul.f32 1.442695, %v1435_v9 }
 0x24e   :  { %2458 = vrcp.f32 %v1673_v54  ;;  %v1824_v44 = vrot.slane %v1823_v28, 1 }
 0x24f   :  { %v3575_v3 = vpop.f32.mrf.mxu0  ;;  %2460 = vpow2.f32 %v1525_v0  ;;  %v1683_v27 = vadd.f32 %v1682_v26, %v1681_v8  ;;  %v1382_v58 = vmax.f32 %v1380_v32, %v1381_v4  ;;  %v1834_v48 = vrot.slane %v1833_v40, 2 }
 0x250   :  { %v1387_v41 = vmax.f32 %v1386_v34, %v3575_v3  ;;  %2462 = vpow2.f32 %v1527_v55  ;;  %v3614_v34 = vld [vmem:[%s3720_s10 + $0x18] sm:$0xff] }
 0x251   :  { %v1684_v43 = vrot.slane %v1683_v27, 1  ;;  %v1437_v31 = vsub.f32 %v3492_v61, %v1382_v58  ;;  %v1438_v59 = vsub.f32 %v3484_v23, %v1382_v58  ;;  %v1439_v42 = vsub.f32 %v3500_v38, %v1382_v58 }
 0x252   :  { %v1388_v12 = vmax.f32 %v1387_v41, %v3570_v15  ;;  %v1440_v5 = vsub.f32 %v3496_v17, %v1382_v58  ;;  %v1441_v11 = vsub.f32 %v3517_v57, %v1382_v58  ;;  %v3591_v61 = vmul.f32 %v2455_v46, %v3307_v39 }
 0x253   :  { %v1685_v6 = vadd.f32 %v1684_v43, %v1683_v27  ;;  %v2457_v10 = vpop.eup %2456  ;;  %v1535_v35 = vmul.f32 1.442695, %v1437_v31  ;;  %v1442_v13 = vsub.f32 %v3503_v22, %v1382_v58  ;;  %v1537_v24 = vmul.f32 1.442695, %v1438_v59 }
 0x254   :  { %v1389_v23 = vrot.slane %v1388_v12, 4  ;;  %v3594_v38 = vmul.f32 %v2457_v10, %v3313_v7  ;;  %v1539_v14 = vmul.f32 1.442695, %v1439_v42  ;;  %v1533_v17 = vmul.f32 1.442695, %v1436_v63  ;;  %v3778_v10 = vld [vmem:[#allocation23_spill] sm:$0xff] }
 0x255   :  { %2464 = vrcp.f32 %v1685_v6  ;;  %v1541_v53 = vmul.f32 1.442695, %v1440_v5  ;;  %v1835_v49 = vadd.f32 %v1834_v48, %v1833_v40  ;;  %v1443_v57 = vsub.f32 %v3533_v16, %v1382_v58  ;;  %v3603_v16 = vld [vmem:[%s3720_s10 + $0x10] sm:$0xff] }
 0x256   :  { %2466 = vpow2.f32 %v1529_v19  ;;  %v1543_v18 = vmul.f32 1.442695, %v1441_v11  ;;  %v1825_v39 = vadd.f32 %v1824_v44, %v1823_v28  ;;  %v1390_v25 = vmax.f32 %v1388_v12, %v1389_v23  ;;  %v3627_v28 = vld [vmem:[%s3720_s10 + $0x20] sm:$0xff]  ;;  %v3779_v11 = vld [vmem:[#allocation24_spill] sm:$0xff] }
 0x257   :  { %2468 = vpow2.f32 %v1531_v30  ;;  %v1686_v7 = vadd.f32 %v3594_v38, %v3591_v61  ;;  %v1545_v22 = vmul.f32 1.442695, %v1442_v13  ;;  %v1836_v29 = vrot.slane %v1835_v49, 1 }
 0x258   :  { %2470 = vpow2.f32 %v1535_v35  ;;  %v1391_v54 = vrot.slane %v1390_v25, 2  ;;  %v1547_v52 = vmul.f32 1.442695, %v1443_v57  ;;  %v1757_v63 = vmul.f32 %v3591_v61, %v3778_v10 }
 0x259   :  { %2472 = vpow2.f32 %v1537_v24  ;;  %v1837_v21 = vadd.f32 %v1836_v29, %v1835_v49  ;;  %v1758_v44 = vmul.f32 %v3594_v38, %v3779_v11  ;;  %v3649_v24 = vld [vmem:[%s3720_s10 + $0x28] sm:$0xff]  ;;  %v3780_v38 = vld [vmem:[#allocation30_spill] sm:$0xff] }
 0x25a   :  { %2474 = vpow2.f32 %v1539_v14  ;;  %v1392_v1 = vmax.f32 %v1390_v25, %v1391_v54 }
 0x25b   :  { %v2459_v51 = vpop.eup %2458  ;;  %2476 = vpow2.f32 %v1541_v53  ;;  %v1838_v54 = vadd.f32 %v1758_v44, %v1757_v63  ;;  %v3786_v63 = vld [vmem:[#allocation27_spill] sm:$0xff] }
 0x25c   :  { %v2461_v36 = vpop.eup %2460  ;;  %v1885_v56 = vmul.f32 %v2459_v51, %v1825_v39  ;;  %2478 = vpow2.f32 %v1533_v17  ;;  %v1393_v26 = vrot.slane %v1392_v1, 1 }
 0x25d   :  { %v3606_v0 = vmul.f32 %v3603_v16, %v2461_v36  ;;  %2480 = vpow2.f32 %v1543_v18  ;;  %v2463_v20 = vpop.eup %2462 }
 0x25e   :  { %v3608_v8 = vsel %vm1946_vm3, %v1885_v56, %v1945_v47  ;;  %2482 = vpow2.f32 %v1545_v22  ;;  %v3617_v55 = vmul.f32 %v3614_v34, %v2463_v20  ;;  %v1394_v47 = vmax.f32 %v1392_v1, %v1393_v26  ;;  %v3659_v22 = vld [vmem:[%s3720_s10 + $0x30] sm:$0xff] }
 0x25f   :  { %v1687_v45 = vadd.f32 %v1686_v7, %v3606_v0  ;;  %2484 = vpow2.f32 %v1547_v52 }
 0x260   :  { %v1444_v41 = vsub.f32 %v3521_v62, %v1394_v47  ;;  %v1445_v43 = vsub.f32 %v3551_v50, %v1394_v47  ;;  %v1446_v40 = vsub.f32 %v3541_v37, %v1394_v47  ;;  %v1447_v58 = vsub.f32 %v3565_v33, %v1394_v47  ;;  %v2511_v37 = vld [vmem:[%s3720_s10] sm:$0xff] }
 0x261   :  { %v1688_v4 = vadd.f32 %v1687_v45, %v3617_v55  ;;  %v1448_v6 = vsub.f32 %v3556_v60, %v1394_v47  ;;  %v1449_v30 = vsub.f32 %v3575_v3, %v1394_v47  ;;  %v2512_v60 = vld [vmem:[%s3720_s10 + $0x8] sm:$0xff]  ;;  %v1450_v35 = vsub.f32 %v3570_v15, %v1394_v47 }
 0x262   :  { %v2465_v32 = vpop.eup %2464  ;;  %v1549_v33 = vmul.f32 1.442695, %v1444_v41  ;;  %v1551_v31 = vmul.f32 1.442695, %v1445_v43  ;;  %v1553_v12 = vmul.f32 1.442695, %v1446_v40 }
 0x263   :  { %v2467_v2 = vpop.eup %2466  ;;  %v1886_v27 = vmul.f32 %v2465_v32, %v1837_v21  ;;  %v1555_v5 = vmul.f32 1.442695, %v1447_v58  ;;  %v1557_v23 = vmul.f32 1.442695, %v1448_v6  ;;  %v1559_v53 = vmul.f32 1.442695, %v1449_v30 }
 0x264   :  { %v2469_v9 = vpop.eup %2468  ;;  %v3630_v46 = vmul.f32 %v3627_v28, %v2467_v2  ;;  %2486 = vpow2.f32 %v1549_v33  ;;  %v3781_v15 = vld [vmem:[#allocation31_spill] sm:$0xff]  ;;  %v1561_v7 = vmul.f32 1.442695, %v1450_v35  ;;  %v3782_v21 = vld [vmem:[#allocation25_spill] sm:$0xff]  ;;  %v3784_v6 = vld [vmem:[#allocation26_spill] sm:$0xff] }
 0x265   :  { %v2471_v19 = vpop.eup %2470  ;;  %v1610_v61 = vmul.f32 %v3649_v24, %v2469_v9  ;;  %2488 = vpow2.f32 %v1551_v31  ;;  %v3665_v45 = vsel %vm1948_vm4, %v1886_v27, %v3608_v8  ;;  %v1759_v32 = vmul.f32 %v3606_v0, %v3782_v21  ;;  %v3783_v9 = vld [vmem:[#allocation32_spill] sm:$0xff]  ;;  %v3785_v30 = vld [vmem:[#allocation33_spill] sm:$0xff] }
 0x266   :  { %v2473_v62 = vpop.eup %2472  ;;  %v1612_v50 = vmul.f32 %v2511_v37, %v2471_v19  ;;  %v1689_v42 = vadd.f32 %v1688_v4, %v3630_v46  ;;  %2490 = vpow2.f32 %v1553_v12  ;;  %v1760_v8 = vmul.f32 %v3617_v55, %v3784_v6  ;;  %v3787_v55 = vld [vmem:[#allocation34_spill] sm:$0xff] }
 0x267   :  { %v2475_v59 = vpop.eup %2474  ;;  %v1613_v3 = vmul.f32 %v2512_v60, %v2473_v62  ;;  %2492 = vpow2.f32 %v1555_v5  ;;  %v1839_v41 = vadd.f32 %v1838_v54, %v1759_v32 }
 0x268   :  { %v2477_v48 = vpop.eup %2476  ;;  %v1614_v14 = vmul.f32 %v3603_v16, %v2475_v59  ;;  %v1764_v49 = vmul.f32 %v1612_v50, %v3780_v38  ;;  %v1690_v18 = vadd.f32 %v1689_v42, %v1610_v61  ;;  %2494 = vpow2.f32 %v1557_v23  ;;  %v3788_v23 = vld [vmem:[#allocation37_spill] sm:$0xff] }
 0x269   :  { %v2479_v13 = vpop.eup %2478  ;;  %v1698_v51 = vadd.f32 %v1613_v3, %v1612_v50  ;;  %v1765_v57 = vmul.f32 %v1613_v3, %v3781_v15  ;;  %v1615_v39 = vmul.f32 %v3614_v34, %v2477_v48  ;;  %2496 = vpow2.f32 %v1559_v53  ;;  %v3789_v53 = vld [vmem:[#allocation38_spill] sm:$0xff] }
 0x26a   :  { %v2481_v17 = vpop.eup %2480  ;;  %v1611_v56 = vmul.f32 %v3659_v22, %v2479_v13  ;;  %2498 = vpow2.f32 %v1561_v7  ;;  %v1766_v4 = vmul.f32 %v1614_v14, %v3783_v9  ;;  %v1840_v0 = vadd.f32 %v1839_v41, %v1760_v8  ;;  %v3792_v7 = vld [vmem:[#allocation39_spill] sm:$0xff] }
 0x26b   :  { %v1699_v36 = vadd.f32 %v1698_v51, %v1614_v14  ;;  %v2483_v25 = vpop.eup %2482  ;;  %v1616_v29 = vmul.f32 %v3627_v28, %v2481_v17  ;;  %v1850_v1 = vadd.f32 %v1765_v57, %v1764_v49  ;;  %v1767_v62 = vmul.f32 %v1615_v39, %v3785_v30 }
 0x26c   :  { %v2485_v20 = vpop.eup %2484  ;;  %v1691_v26 = vadd.f32 %v1690_v18, %v1611_v56  ;;  %v1617_v2 = vmul.f32 %v3649_v24, %v2483_v25  ;;  %v1761_v3 = vmul.f32 %v3630_v46, %v3786_v63  ;;  %v3790_v46 = vld [vmem:[#allocation28_spill] sm:$0xff] }
 0x26d   :  { %v1700_v52 = vadd.f32 %v1699_v36, %v1615_v39  ;;  %v1618_v43 = vmul.f32 %v3659_v22, %v2485_v20  ;;  %v1851_v58 = vadd.f32 %v1850_v1, %v1766_v4  ;;  %v1768_v35 = vmul.f32 %v1616_v29, %v3787_v55  ;;  %v3791_v39 = vld [vmem:[#allocation35_spill] sm:$0xff] }
 0x26e   :  { %v1692_v19 = vrot.slane %v1691_v26, 4  ;;  %v1841_v51 = vadd.f32 %v1840_v0, %v1761_v3  ;;  %v1769_v36 = vmul.f32 %v1617_v2, %v3791_v39 }
 0x26f   :  { %v1701_v47 = vadd.f32 %v1700_v52, %v1616_v29  ;;  %v1852_v59 = vadd.f32 %v1851_v58, %v1767_v62  ;;  %v3797_v62 = vld [vmem:[#allocation42_spill] sm:$0xff] }
 0x270   :  { %v1693_v10 = vadd.f32 %v1692_v19, %v1691_v26  ;;  %v3796_v19 = vld [vmem:[#allocation41_spill] sm:$0xff] }
 0x271   :  { %v1702_v40 = vadd.f32 %v1701_v47, %v1617_v2  ;;  %v2487_v50 = vpop.eup %2486  ;;  %v1853_v49 = vadd.f32 %v1852_v59, %v1768_v35  ;;  %v3795_v2 = vld [vmem:[#allocation29_spill] sm:$0xff] }
 0x272   :  { %v2489_v31 = vpop.eup %2488  ;;  %v1619_v12 = vmul.f32 %v2511_v37, %v2487_v50  ;;  %v1694_v57 = vrot.slane %v1693_v10, 2 }
 0x273   :  { %v1703_v27 = vadd.f32 %v1702_v40, %v1618_v43  ;;  %v2491_v42 = vpop.eup %2490  ;;  %v1620_v5 = vmul.f32 %v2512_v60, %v2489_v31  ;;  %v1762_v60 = vmul.f32 %v1610_v61, %v3790_v46  ;;  %v1854_v32 = vadd.f32 %v1853_v49, %v1769_v36  ;;  %v3794_v61 = vld [vmem:[#allocation36_spill] sm:$0xff] }
 0x274   :  { %v2493_v48 = vpop.eup %2492  ;;  %v1621_v44 = vmul.f32 %v3603_v16, %v2491_v42  ;;  %v1771_v13 = vmul.f32 %v1619_v12, %v3788_v23  ;;  %v1695_v9 = vadd.f32 %v1694_v57, %v1693_v10  ;;  %v1770_v4 = vmul.f32 %v1618_v43, %v3794_v61 }
 0x275   :  { %v1704_v33 = vrot.slane %v1703_v27, 4  ;;  %v2495_v14 = vpop.eup %2494  ;;  %v1710_v17 = vadd.f32 %v1620_v5, %v1619_v12  ;;  %v1772_v37 = vmul.f32 %v1620_v5, %v3789_v53  ;;  %v1622_v38 = vmul.f32 %v3614_v34, %v2493_v48  ;;  %v3793_v34 = vld [vmem:[#allocation40_spill] sm:$0xff] }
 0x276   :  { %v2497_v15 = vpop.eup %2496  ;;  %v1623_v25 = vmul.f32 %v3627_v28, %v2495_v14  ;;  %v1773_v54 = vmul.f32 %v1621_v44, %v3792_v7  ;;  %v1842_v20 = vadd.f32 %v1841_v51, %v1762_v60  ;;  %v1763_v40 = vmul.f32 %v1611_v56, %v3795_v2 }
 0x277   :  { %v1705_v11 = vadd.f32 %v1704_v33, %v1703_v27  ;;  %v1711_v18 = vadd.f32 %v1710_v17, %v1621_v44  ;;  %v1862_v29 = vadd.f32 %v1772_v37, %v1771_v13  ;;  %v2499_v52 = vpop.eup %2498  ;;  %v1624_v26 = vmul.f32 %v3649_v24, %v2497_v15  ;;  %v789_v33 = vpop.f32.mrf.mxu1 }
 0x278   :  { %v1774_v21 = vmul.f32 %v1622_v38, %v3793_v34  ;;  %v1625_v28 = vmul.f32 %v3659_v22, %v2499_v52  ;;  %v1775_v6 = vmul.f32 %v1623_v25, %v3796_v19  ;;  %v1843_v30 = vadd.f32 %v1842_v20, %v1763_v40  ;;  %v3798_v34 = vld [vmem:[#allocation8_spill] sm:$0xff] }
 0x279   :  { %v1706_v16 = vrot.slane %v1705_v11, 2  ;;  %v1712_v1 = vadd.f32 %v1711_v18, %v1622_v38  ;;  %v1863_v47 = vadd.f32 %v1862_v29, %v1773_v54  ;;  %v1776_v24 = vmul.f32 %v1624_v26, %v3797_v62 }
 0x27a   :  { %v1855_v50 = vadd.f32 %v1854_v32, %v1770_v4  ;;  %v1696_v31 = vrot.slane %v1695_v9, 1  ;;  %v1777_v43 = vmul.f32 %v1625_v28, %v789_v33  ;;  %v1844_v56 = vrot.slane %v1843_v30, 4  ;;  %v1922_v32 = vld [vmem:[%s3716_s6] sm:$0x3] }
 0x27b   :  { %v1713_v41 = vadd.f32 %v1712_v1, %v1623_v25  ;;  %v1707_v58 = vadd.f32 %v1706_v16, %v1705_v11  ;;  %v1864_v8 = vadd.f32 %v1863_v47, %v1774_v21  ;;  %v1930_v21 = vsub.s32 1, %v3798_v34  ;;  %v3799_v47 = vld [vmem:[#allocation9_spill] sm:$0xff]  ;;  %v2059_v33 = vld [vmem:[%s3718_s8] sm:$0x3] }
 0x27c   :  { %v1856_v63 = vrot.slane %v1855_v50, 4  ;;  %v1697_v22 = vadd.f32 %v1696_v31, %v1695_v9  ;;  %v1845_v44 = vadd.f32 %v1844_v56, %v1843_v30  ;;  %v1927_v9 = vrot.slane %v1922_v32, %v3799_v47 }
 0x27d   :  { %v1714_v27 = vadd.f32 %v1713_v41, %v1624_v26  ;;  %v1865_v0 = vadd.f32 %v1864_v8, %v1775_v6  ;;  %v1708_v59 = vrot.slane %v1707_v58, 1  ;;  %v1931_v61 = vrot.slane %v1922_v32, %v1930_v21 }
 0x27e   :  { %v1857_v35 = vadd.f32 %v1856_v63, %v1855_v50  ;;  %2500 = vrcp.f32 %v1697_v22  ;;  %v1846_v14 = vrot.slane %v1845_v44, 2  ;;  %v2068_v56 = vrot.slane %v2059_v33, %v1930_v21 }
 0x27f   :  { %v1715_v12 = vadd.f32 %v1714_v27, %v1625_v28  ;;  %v1866_v42 = vadd.f32 %v1865_v0, %v1776_v24  ;;  %v1709_v48 = vadd.f32 %v1708_v59, %v1707_v58  ;;  %v2045_v0 = vld [vmem:[%s3717_s7] sm:$0x3]  ;;  %s2535_s7 = scalar_lea.vmem %s2082_s23, 256 }
 0x280   :  { %v1858_v17 = vrot.slane %v1857_v35, 2  ;;  %v1847_v37 = vadd.f32 %v1846_v14, %v1845_v44  ;;  %v2050_v31 = vrot.slane %v2045_v0, %v3799_v47  ;;  %p2536_p5 = scmp.ne.s32.totalorder %s2082_s23, %s2535_s7  ;;  %p2541_p7 = scmp.lt.s32.totalorder %s2535_s7, %s2535_s7 }
 0x281   :  { %v1716_v10 = vrot.slane %v1715_v12, 4  ;;  %v1867_v3 = vadd.f32 %v1866_v42, %v1777_v43  ;;  %2502 = vrcp.f32 %v1709_v48 }
 0x282   :  { %v1859_v49 = vadd.f32 %v1858_v17, %v1857_v35  ;;  %v1848_v15 = vrot.slane %v1847_v37, 1  ;;  %p2542_p8 = por %p2541_p7, %p2540_p6 }
 0x283   :  { %v1717_v5 = vadd.f32 %v1716_v10, %v1715_v12  ;;  %v1868_v55 = vrot.slane %v1867_v3, 4  ;;  %v2054_v12 = vrot.slane %v2045_v0, %v1930_v21  ;;  %v2064_v10 = vrot.slane %v2059_v33, %v3799_v47 }
 0x284   :  { %v1860_v46 = vrot.slane %v1859_v49, 1  ;;  %v1849_v39 = vadd.f32 %v1848_v15, %v1847_v37  ;;  %p2543_p9 = pnand %p2542_p8, %p2536_p5 }
 0x285   :  { %v1718_v11 = vrot.slane %v1717_v5, 2  ;;  %v1869_v51 = vadd.f32 %v1868_v55, %v1867_v3 }
 0x286   :  { %v1861_v16 = vadd.f32 %v1860_v46, %v1859_v49 }
 0x287   :  { %v1719_v23 = vadd.f32 %v1718_v11, %v1717_v5  ;;  %v1870_v38 = vrot.slane %v1869_v51, 2 }
 0x289   :  { %v1720_v13 = vrot.slane %v1719_v23, 1  ;;  %v1871_v57 = vadd.f32 %v1870_v38, %v1869_v51 }
 0x28b   :  { %v1721_v53 = vadd.f32 %v1720_v13, %v1719_v23  ;;  %v2501_v60 = vpop.eup %2500  ;;  %v1872_v36 = vrot.slane %v1871_v57, 1 }
 0x28c   :  { %v1887_v25 = vmul.f32 %v2501_v60, %v1849_v39 }
 0x28d   :  { %2504 = vrcp.f32 %v1721_v53  ;;  %v1873_v54 = vadd.f32 %v1872_v36, %v1871_v57 }
 0x28e   :  { %v2503_v18 = vpop.eup %2502  ;;  %v1951_v20 = vsel %vm1950_vm5, %v1887_v25, %v3665_v45 }
 0x28f   :  { %v1888_v7 = vmul.f32 %v2503_v18, %v1861_v16 }
 0x291   :  { %v1953_v1 = vsel %vm1952_vm6, %v1888_v7, %v1951_v20 }
 0x29a   :  { %v2505_v29 = vpop.eup %2504 }
 0x29b   :  { %v1889_v52 = vmul.f32 %v2505_v29, %v1873_v54 }
 0x29d   :  { %v1955_v26 = vsel %vm1954_vm7, %v1889_v52, %v1953_v1 }
 0x29e   :  { %2022 = vmatmul.mubr.f32.vlgmr.msra.gmra.mxu0 %v1955_v26 }
 0x35e   :  { %v2023_v4 = vpop.f32.mrf.mxu0 }
 0x35f   :  { %v2024_v2 = vadd.f32 %v2023_v4, %v1927_v9 }
 0x360   :  { %v2025_v41 = vpop.f32.mrf.mxu0 }
 0x361   :  { %v2026_v40 = vadd.f32 %v2025_v41, %v1931_v61 }
 0x363   :  { %v2028_v58 = vadd.f32 %v2026_v40, %v2024_v2 }
 0x365   :  { %2029 = vadd.xlane.f32.xlu0 %v2028_v58 }
 0x3ee   :  { %v2030_v28 = vpop.xlane.xlu0 %2029 }
 0x3ef   :  { %v2032_v45 = vmul.f32 0.00390625, %v2030_v28 }
 0x3f1   :  { %v2033_v19 = vsub.f32 %v2024_v2, %v2032_v45  ;;  %v2034_v6 = vsub.f32 %v2026_v40, %v2032_v45 }
 0x3f3   :  { %v2035_v8 = vmul.f32 %v2033_v19, %v2033_v19  ;;  %v2036_v27 = vmul.f32 %v2034_v6, %v2034_v6 }
 0x3f5   :  { %v2037_v30 = vadd.f32 %v2036_v27, %v2035_v8 }
 0x3f7   :  { %2038 = vadd.xlane.f32.xlu0 %v2037_v30 }
 0x480   :  { %v2039_v62 = vpop.xlane.xlu0 %2038 }
 0x481   :  { %v2040_v24 = vmul.f32 0.00390625, %v2039_v62 }
 0x483   :  { %v2041_v50 = vadd.f32 1e-05, %v2040_v24 }
 0x485   :  { %2506 = vrsqrt.f32 %v2041_v50 }
 0x492   :  { %v2507_v59 = vpop.eup %2506 }
 0x493   :  { %v2043_v43 = vmul.f32 %v2507_v59, %v2033_v19  ;;  %v2044_v42 = vmul.f32 %v2507_v59, %v2034_v6 }
 0x495   :  { %v2057_v63 = vmul.f32 %v2050_v31, %v2043_v43  ;;  %v2058_v3 = vmul.f32 %v2054_v12, %v2044_v42 }
 0x497   :  { %v2071_v22 = vadd.f32 %v2064_v10, %v2057_v63  ;;  %v2072_v5 = vadd.f32 %v2068_v56, %v2058_v3 }
 0x499   :  { %2073 = vst [vmem:[#allocation5] sm:$0xff] %v2071_v22  ;;  %2074 = vst [vmem:[#allocation5 + $0x8] sm:$0xff] %v2072_v5 }
 0x49a   :  { %2546 = shalt.err (!%p2543_p9)
}
 0x49b   :  { %2084 = dma.vmem_to_hbm [thread:$0]  %s2082_s23, 256, %s3721_s11, [#allocation4]  }
 0x49c   :  { %2557 = dma.done.wait [#allocation4], 256  }
 0x49d   :  { %2558 = vsyncadd [#allocation4], 4294967040 }
 0x49e   :  { %2088 = vsyncpa [#allocation3], 1 }
 0x49f   :  { %2089 = vsyncpa [#allocation4], 1 }

</bundles_post_ra>
